<compile_context>
chip_gen: v5e
topology: v5e:2x2
jax: 0.10.0
libtpu: 0.0.40
codegen_flags: <defaults>
</compile_context>

<pallas_src>
import functools

import numpy as np
import jax
import jax.numpy as jnp
from jax import lax
from jax.experimental import pallas as pl
from jax.experimental.pallas import tpu as pltpu

# 3x3 smoothing filter from Subdivide.__init__ (same filter per channel, groups=3).
_W = np.array(
    [[0.025, 0.1, 0.025],
     [0.1,   0.5, 0.1],
     [0.025, 0.1, 0.025]],
    dtype=np.float32,
)


def _bilinear_matrix(n_in: int, n_out: int) -> np.ndarray:
    """1-D bilinear interpolation matrix (PyTorch align_corners=True)."""
    A = np.zeros((n_out, n_in), dtype=np.float64)
    if n_in == 1:
        A[:, 0] = 1.0
        return A.astype(np.float32)
    scale = (n_in - 1) / (n_out - 1)
    for i in range(n_out):
        src = i * scale
        i0 = min(int(np.floor(src)), n_in - 1)
        i1 = min(i0 + 1, n_in - 1)
        frac = src - i0
        A[i, i0] += 1.0 - frac
        A[i, i1] += frac
    return A.astype(np.float32)


def _folded_matrices(h: int):
    """P, Qt with conv3x3_valid(bilinear_up_2h+2(x)) == sum_k P[k] @ x @ Qt[k]."""
    S = 2 * h + 2
    Ho = 2 * h
    A = _bilinear_matrix(h, S).astype(np.float64)             # (S, h)
    lam, q = np.linalg.eigh(_W.astype(np.float64))            # _W = q diag(lam) q^T
    keep = np.abs(lam) > 1e-9                                 # exact: filter is rank 2
    lam, q = lam[keep], q[:, keep]                            # (nk,), (3, nk)
    Ashift = np.stack([A[d:d + Ho, :] for d in range(3)])     # (3, Ho, h)
    P = np.einsum('dk,drp->krp', q * lam[None, :], Ashift)    # (nk, Ho, h)
    Q = np.einsum('dk,dcq->kcq', q, Ashift)                   # (nk, Ho, h)
    Qt = np.transpose(Q, (0, 2, 1))                           # (nk, h, Ho)
    return P.astype(np.float32), Qt.astype(np.float32)


def _step_matrices(h: int, nb: int, k_cap: int):
    """Fused matrices for one step: row matrix Pcat and column matrix Q.

    kron mode : Q = [kron(I_nb, Qt_0); kron(I_nb, Qt_1)]  (nk*nb*h, nb*2h)
    plane mode: Q = [Qt_0; Qt_1]                          (nk*h, 2h)
    """
    P, Qt = _folded_matrices(h)                               # (nk,2h,h), (nk,h,2h)
    nk = P.shape[0]
    Pcat = np.ascontiguousarray(P.reshape(nk * 2 * h, h))     # rank terms stacked on rows
    if nb > 1 and nb * h <= k_cap:
        eye = np.eye(nb, dtype=np.float32)
        Q = np.concatenate([np.kron(eye, Qt[k]) for k in range(nk)], axis=0)
        mode = "kron"
    else:
        Q = np.ascontiguousarray(Qt.reshape(nk * h, 2 * h))
        mode = "plane"
    return Pcat, Q, mode


def _device_kind() -> str:
    try:
        return jax.devices()[0].device_kind.lower()
    except Exception:
        return ""


def _plane_chunk(n_planes: int, h: int, steps: int, kind: str):
    """Planes per grid chunk, number of chunks, and the MXU contraction cap.

    * nb*H capped at the MXU native depth (128 on v2-v5, 256 on v6e/v7x)
    * per-chunk output slab (f32, double-buffered) kept around <= 8 MiB
    * on v7x (2 TensorCores) force >= 2 parallel chunks whenever BC permits
    * nb never exceeds n_planes (minimal zero-padding waste)
    """
    k_cap = 256 if ("v6" in kind or "v7" in kind) else 128
    hf = h << steps
    nb_max = max(1, min(n_planes, k_cap // max(h, 1)))
    slab_cap = max(1, (8 << 20) // (8 * hf * hf))
    nb_max = min(nb_max, slab_cap)
    min_chunks = 2 if ("v7" in kind and n_planes >= 2) else 1
    num_chunks = max(min_chunks, -(-n_planes // nb_max))
    nb = -(-n_planes // num_chunks)
    return nb, num_chunks, k_cap


@functools.lru_cache(maxsize=None)
def _buffered1_supported() -> bool:
    """One-time probe: do single-buffered constants (pl.Buffered(1)) work here?"""
    try:
        spec = pl.BlockSpec((8, 128), lambda i: (0, 0),
                            pipeline_mode=pl.Buffered(1))
    except Exception:
        return False

    def _probe(x_ref, o_ref):
        o_ref[...] = x_ref[...] + 1.0

    try:
        fn = pl.pallas_call(
            _probe,
            out_shape=jax.ShapeDtypeStruct((8, 128), jnp.float32),
            grid=(2,),
            in_specs=[spec],
            out_specs=pl.BlockSpec((8, 128), lambda i: (0, 0)),
        )
        x = jnp.arange(8 * 128, dtype=jnp.float32).reshape(8, 128)
        y = jax.jit(fn)(x)
        return bool(jnp.allclose(y, x + 1.0))
    except Exception:
        return False


def _const_spec(shape):
    """BlockSpec for a grid-invariant constant (single-buffered when supported)."""
    index_map = lambda *_: (0,) * len(shape)
    if _buffered1_supported():
        return pl.BlockSpec(shape, index_map, pipeline_mode=pl.Buffered(1))
    return pl.BlockSpec(shape, index_map)


def _subdivide_kernel(*refs, steps: int, nb: int, modes):
    """refs = [Pcat_0, Q_0, ..., Pcat_{steps-1}, Q_{steps-1}, x, out].

    Pcat_s : (nk*2h_s, h_s)                      row-pass matrix (rank terms fused)
    Q_s    : kron  -> (nk*nb*h_s, nb*2h_s)       K-stacked block-diagonal column matrix
             plane -> (nk*h_s, 2h_s)             shared per-plane column matrix
    x      : (1, H, nb*W)                        nb planes lane-stacked
    out    : (nb, Hf, Hf)                        per-plane output (no wrapper transpose)
    """
    x_ref = refs[2 * steps]
    o_ref = refs[2 * steps + 1]

    cur = x_ref[0].astype(jnp.float32)                     # (h, nb*h)
    h = cur.shape[0]
    for s in range(steps):
        p_ref, q_ref = refs[2 * s], refs[2 * s + 1]
        two_h = 2 * h
        nk = p_ref.shape[0] // two_h
        last = s == steps - 1

        # Row pass: all rank terms in one MXU call.
        t = jnp.dot(p_ref[...], cur,
                    preferred_element_type=jnp.float32,
                    precision=lax.Precision.HIGHEST)       # (nk*2h, nb*h)

        if modes[s] == "kron":
            # Column pass: one dot against the K-stacked block-diagonal matrix.
            tcat = jnp.concatenate(
                [t[k * two_h:(k + 1) * two_h] for k in range(nk)],
                axis=1)                                    # (2h, nk*nb*h)
            cur = jnp.dot(tcat, q_ref[...],
                          preferred_element_type=jnp.float32,
                          precision=lax.Precision.HIGHEST)  # (2h, nb*2h)
            if last:
                for j in range(nb):
                    o_ref[j] = cur[:, j * two_h:(j + 1) * two_h].astype(o_ref.dtype)
        else:
            # Per-plane column pass with one shared Qt (no nb^2 kron growth,
            # no x-nb wasted MXU K once h reaches the native depth).
            qt = q_ref[...]                                # (nk*h, 2h)
            outs = []
            for j in range(nb):
                tj = jnp.concatenate(
                    [t[k * two_h:(k + 1) * two_h, j * h:(j + 1) * h]
                     for k in range(nk)], axis=1)          # (2h, nk*h)
                oj = jnp.dot(tj, qt,
                             preferred_element_type=jnp.float32,
                             precision=lax.Precision.HIGHEST)   # (2h, 2h)
                if last:
                    o_ref[j] = oj.astype(o_ref.dtype)
                else:
                    outs.append(oj)
            if not last:
                cur = jnp.concatenate(outs, axis=1)        # (2h, nb*2h)
        h = two_h


@functools.partial(jax.jit, static_argnames=("steps",))
def subdivide(x: jax.Array, steps: int = 1) -> jax.Array:
    assert steps >= 1
    B, C, H, W = x.shape
    assert H == W, "Subdivide assumes square spatial input (uses x.size(-1))."
    BC = B * C
    Hf = H << steps

    kind = _device_kind()
    nb, num_chunks, k_cap = _plane_chunk(BC, H, steps, kind)
    BC_pad = nb * num_chunks
    itemsize = jnp.dtype(x.dtype).itemsize

    # Host-side precompute of the fused step matrices (+ VMEM bookkeeping).
    mats, in_specs, modes = [], [], []
    const_bytes = 0
    work_bytes = 0
    h = H
    for _ in range(steps):
        Pcat, Q, mode = _step_matrices(h, nb, k_cap)
        modes.append(mode)
        mats += [jnp.asarray(Pcat), jnp.asarray(Q)]
        in_specs += [_const_spec(Pcat.shape), _const_spec(Q.shape)]
        const_bytes += 4 * (Pcat.size + Q.size)
        nk = Pcat.shape[0] // (2 * h)
        work_bytes = max(
            work_bytes,
            4 * (h * nb * h                 # cur (in)
                 + nk * 2 * h * nb * h      # t
                 + 2 * h * nk * nb * h      # tcat / per-plane slices
                 + 2 * h * nb * 2 * h))     # cur (out)
        h *= 2

    # Planes -> per-chunk lane-stacked slabs: (num_chunks, H, nb*W).
    xs = x.reshape(BC, H, W)
    if BC_pad != BC:
        xs = jnp.concatenate(
            [xs, jnp.zeros((BC_pad - BC, H, W), x.dtype)], axis=0)
    X = xs.reshape(num_chunks, nb, H, W).transpose(0, 2, 1, 3).reshape(
        num_chunks, H, nb * W)
    in_specs.append(pl.BlockSpec((1, H, nb * W), lambda i: (i, 0, 0)))

    # Explicit VMEM limit: constants + double-buffered I/O chunks + live slabs.
    const_buf = 1 if _buffered1_supported() else 2
    need = (const_buf * const_bytes
            + 2 * (H * nb * W * itemsize)
            + 2 * (nb * Hf * Hf * itemsize)
            + work_bytes)
    ceiling = (56 << 20) if "v7" in kind else (100 << 20)
    vmem_limit = int(max(32 << 20, min(int(need * 1.5) + (8 << 20), ceiling)))

    out = pl.pallas_call(
        functools.partial(_subdivide_kernel, steps=steps, nb=nb,
                          modes=tuple(modes)),
        out_shape=jax.ShapeDtypeStruct((BC_pad, Hf, Hf), x.dtype),
        grid_spec=pltpu.PrefetchScalarGridSpec(
            num_scalar_prefetch=0,
            grid=(num_chunks,),
            in_specs=in_specs,
            out_specs=pl.BlockSpec((nb, Hf, Hf), lambda i: (i, 0, 0)),
        ),
        compiler_params=pltpu.CompilerParams(
            dimension_semantics=("parallel",),
            vmem_limit_bytes=vmem_limit),
    )(*mats, X)

    # Per-plane kernel output -> NCHW; only a cheap slice + reshape remains.
    return out[:BC].reshape(B, C, Hf, Hf)


def subdivide_ref(x: jax.Array, steps: int = 1) -> jax.Array:
    """Pure-JAX reference: interpolation matrix + explicit 3x3 valid conv."""
    for _ in range(steps):
        H = x.shape[-1]
        S = 2 * H + 2
        A = jnp.asarray(_bilinear_matrix(H, S))
        y = jnp.einsum('sp,bcpq,tq->bcst', A, x, A,
                       precision=lax.Precision.HIGHEST)
        Ho = S - 2
        out = jnp.zeros(y.shape[:-2] + (Ho, Ho), jnp.float32)
        for di in range(3):
            for dj in range(3):
                out = out + float(_W[di, dj]) * y[..., di:di + Ho, dj:dj + Ho]
        x = out.astype(x.dtype)
    return x


if __name__ == "__main__":
    key = jax.random.PRNGKey(0)
    # channels must be 3: the module's smoothing buffer is 3 depthwise filters (groups=3)
    x = jax.random.normal(key, (2, 3, 16, 16), dtype=jnp.float32)

    out1 = jax.block_until_ready(subdivide(x, steps=1))
    ref1 = jax.block_until_ready(subdivide_ref(x, steps=1))
    assert out1.shape == (2, 3, 32, 32), out1.shape
    np.testing.assert_allclose(np.asarray(out1), np.asarray(ref1),
                               rtol=1e-4, atol=1e-4)

    # Fused multi-step path (intermediate never leaves VMEM).
    out2 = jax.block_until_ready(subdivide(x, steps=2))
    ref2 = jax.block_until_ready(subdivide_ref(x, steps=2))
    assert out2.shape == (2, 3, 64, 64), out2.shape
    np.testing.assert_allclose(np.asarray(out2), np.asarray(ref2),
                               rtol=1e-4, atol=1e-4)

    print("KERNEL_OK")
</pallas_src>

<mosaic_0001>
module attributes {stable_mosaic.version = 11 : i64} {
  func.func @_probe(%arg0: i32, %arg1: memref<8x128xf32, #tpu.memory_space<vmem>>, %arg2: memref<8x128xf32, #tpu.memory_space<vmem>>) attributes {dimension_semantics = [#tpu.dimension_semantics<arbitrary>], iteration_bounds = array<i64: 2>, scalar_prefetch = 0 : i64, scratch_operands = 0 : i64, tpu.core_type = #tpu.core_type<tc>, window_params = [{pipeline_mode = #tpu.pipeline_mode<synchronous>, transform_indices = @transform_0, window_bounds = array<i64: 8, 128>}, {pipeline_mode = #tpu.pipeline_mode<synchronous>, transform_indices = @transform_1, window_bounds = array<i64: 8, 128>}]} {
    %c0 = arith.constant 0 : index
    %c0_0 = arith.constant 0 : index
    %0 = vector.load %arg1[%c0, %c0_0] : memref<8x128xf32, #tpu.memory_space<vmem>>, vector<8x128xf32>
    %cst = arith.constant 1.000000e+00 : f32
    %1 = vector.broadcast %cst : f32 to vector<8x128xf32>
    %2 = arith.addf %0, %1 : vector<8x128xf32>
    %c0_1 = arith.constant 0 : index
    %c0_2 = arith.constant 0 : index
    %3 = vector.load %arg2[%c0_1, %c0_2] : memref<8x128xf32, #tpu.memory_space<vmem>>, vector<8x128xf32>
    tpu.vector_store %arg2[%c0_1, %c0_2], %2 {strides = array<i32>} : memref<8x128xf32, #tpu.memory_space<vmem>>, vector<8x128xf32>,
    return
  }
  func.func @transform_0(%arg0: i32) -> (i32, i32) {
    %c0_i32 = arith.constant 0 : i32
    %c0_i32_0 = arith.constant 0 : i32
    %c0_i32_1 = arith.constant 0 : i32
    return %c0_i32, %c0_i32_0 : i32, i32
  }
  func.func @transform_1(%arg0: i32) -> (i32, i32) {
    %c0_i32 = arith.constant 0 : i32
    %c0_i32_0 = arith.constant 0 : i32
    %c0_i32_1 = arith.constant 0 : i32
    return %c0_i32, %c0_i32_0 : i32, i32
  }
}

module attributes {stable_mosaic.version = 11 : i64} {
  func.func @_subdivide_kernel(%arg0: i32, %arg1: memref<64x16xf32, #tpu.memory_space<vmem>>, %arg2: memref<192x192xf32, #tpu.memory_space<vmem>>, %arg3: memref<1x16x96xf32, #tpu.memory_space<vmem>>, %arg4: memref<6x32x32xf32, #tpu.memory_space<vmem>>) attributes {dimension_semantics = [#tpu.dimension_semantics<parallel>], iteration_bounds = array<i64: 1>, scalar_prefetch = 0 : i64, scratch_operands = 0 : i64, tpu.core_type = #tpu.core_type<tc>, window_params = [{pipeline_mode = #tpu.pipeline_mode<synchronous>, transform_indices = @transform_0, window_bounds = array<i64: 64, 16>}, {pipeline_mode = #tpu.pipeline_mode<synchronous>, transform_indices = @transform_1, window_bounds = array<i64: 192, 192>}, {transform_indices = @transform_2, window_bounds = array<i64: 1, 16, 96>}, {transform_indices = @transform_3, window_bounds = array<i64: 6, 32, 32>}]} {
    %c0 = arith.constant 0 : index
    %c0_0 = arith.constant 0 : index
    %c0_1 = arith.constant 0 : index
    %0 = vector.load %arg3[%c0, %c0_0, %c0_1] : memref<1x16x96xf32, #tpu.memory_space<vmem>>, vector<1x16x96xf32>
    %1 = vector.shape_cast %0 : vector<1x16x96xf32> to vector<16x96xf32>
    %c0_2 = arith.constant 0 : index
    %c0_3 = arith.constant 0 : index
    %2 = vector.load %arg1[%c0_2, %c0_3] : memref<64x16xf32, #tpu.memory_space<vmem>>, vector<64x16xf32>
    %cst = arith.constant dense<0.000000e+00> : vector<64x96xf32>
    %3 = tpu.matmul %2, %1, %cst {dimension_numbers = #tpu.dot_dimension_numbers<[1], [0], [0], [1], [0, 0, 1, 1], [], []>, precision = #tpu.contract_precision<fp32>} : vector<64x16xf32>, vector<16x96xf32>, vector<64x96xf32> -> vector<64x96xf32>
    %4 = vector.extract_strided_slice %3 {offsets = [0, 0], sizes = [32, 96], strides = [1, 1]} : vector<64x96xf32> to vector<32x96xf32>
    %5 = vector.extract_strided_slice %3 {offsets = [32, 0], sizes = [32, 96], strides = [1, 1]} : vector<64x96xf32> to vector<32x96xf32>
    %6 = tpu.concatenate %4, %5 in 1 : vector<32x96xf32>, vector<32x96xf32> -> vector<32x192xf32>
    %c0_4 = arith.constant 0 : index
    %c0_5 = arith.constant 0 : index
    %7 = vector.load %arg2[%c0_4, %c0_5] : memref<192x192xf32, #tpu.memory_space<vmem>>, vector<192x192xf32>
    %cst_6 = arith.constant dense<0.000000e+00> : vector<32x192xf32>
    %8 = tpu.matmul %6, %7, %cst_6 {dimension_numbers = #tpu.dot_dimension_numbers<[1], [0], [0], [1], [0, 0, 1, 1], [], []>, precision = #tpu.contract_precision<fp32>} : vector<32x192xf32>, vector<192x192xf32>, vector<32x192xf32> -> vector<32x192xf32>
    %9 = vector.extract_strided_slice %8 {offsets = [0, 0], sizes = [32, 32], strides = [1, 1]} : vector<32x192xf32> to vector<32x32xf32>
    %c0_7 = arith.constant 0 : index
    %c0_8 = arith.constant 0 : index
    %c0_9 = arith.constant 0 : index
    %10 = vector.load %arg4[%c0_7, %c0_8, %c0_9] : memref<6x32x32xf32, #tpu.memory_space<vmem>>, vector<1x32x32xf32>
    %11 = vector.shape_cast %10 : vector<1x32x32xf32> to vector<32x32xf32>
    %12 = vector.shape_cast %9 : vector<32x32xf32> to vector<1x32x32xf32>
    tpu.vector_store %arg4[%c0_7, %c0_8, %c0_9], %12 {strides = array<i32>} : memref<6x32x32xf32, #tpu.memory_space<vmem>>, vector<1x32x32xf32>,
    %13 = vector.extract_strided_slice %8 {offsets = [0, 32], sizes = [32, 32], strides = [1, 1]} : vector<32x192xf32> to vector<32x32xf32>
    %c1 = arith.constant 1 : index
    %c0_10 = arith.constant 0 : index
    %c0_11 = arith.constant 0 : index
    %14 = vector.load %arg4[%c1, %c0_10, %c0_11] : memref<6x32x32xf32, #tpu.memory_space<vmem>>, vector<1x32x32xf32>
    %15 = vector.shape_cast %14 : vector<1x32x32xf32> to vector<32x32xf32>
    %16 = vector.shape_cast %13 : vector<32x32xf32> to vector<1x32x32xf32>
    tpu.vector_store %arg4[%c1, %c0_10, %c0_11], %16 {strides = array<i32>} : memref<6x32x32xf32, #tpu.memory_space<vmem>>, vector<1x32x32xf32>,
    %17 = vector.extract_strided_slice %8 {offsets = [0, 64], sizes = [32, 32], strides = [1, 1]} : vector<32x192xf32> to vector<32x32xf32>
    %c2 = arith.constant 2 : index
    %c0_12 = arith.constant 0 : index
    %c0_13 = arith.constant 0 : index
    %18 = vector.load %arg4[%c2, %c0_12, %c0_13] : memref<6x32x32xf32, #tpu.memory_space<vmem>>, vector<1x32x32xf32>
    %19 = vector.shape_cast %18 : vector<1x32x32xf32> to vector<32x32xf32>
    %20 = vector.shape_cast %17 : vector<32x32xf32> to vector<1x32x32xf32>
    tpu.vector_store %arg4[%c2, %c0_12, %c0_13], %20 {strides = array<i32>} : memref<6x32x32xf32, #tpu.memory_space<vmem>>, vector<1x32x32xf32>,
    %21 = vector.extract_strided_slice %8 {offsets = [0, 96], sizes = [32, 32], strides = [1, 1]} : vector<32x192xf32> to vector<32x32xf32>
    %c3 = arith.constant 3 : index
    %c0_14 = arith.constant 0 : index
    %c0_15 = arith.constant 0 : index
    %22 = vector.load %arg4[%c3, %c0_14, %c0_15] : memref<6x32x32xf32, #tpu.memory_space<vmem>>, vector<1x32x32xf32>
    %23 = vector.shape_cast %22 : vector<1x32x32xf32> to vector<32x32xf32>
    %24 = vector.shape_cast %21 : vector<32x32xf32> to vector<1x32x32xf32>
    tpu.vector_store %arg4[%c3, %c0_14, %c0_15], %24 {strides = array<i32>} : memref<6x32x32xf32, #tpu.memory_space<vmem>>, vector<1x32x32xf32>,
    %25 = vector.extract_strided_slice %8 {offsets = [0, 128], sizes = [32, 32], strides = [1, 1]} : vector<32x192xf32> to vector<32x32xf32>
    %c4 = arith.constant 4 : index
    %c0_16 = arith.constant 0 : index
    %c0_17 = arith.constant 0 : index
    %26 = vector.load %arg4[%c4, %c0_16, %c0_17] : memref<6x32x32xf32, #tpu.memory_space<vmem>>, vector<1x32x32xf32>
    %27 = vector.shape_cast %26 : vector<1x32x32xf32> to vector<32x32xf32>
    %28 = vector.shape_cast %25 : vector<32x32xf32> to vector<1x32x32xf32>
    tpu.vector_store %arg4[%c4, %c0_16, %c0_17], %28 {strides = array<i32>} : memref<6x32x32xf32, #tpu.memory_space<vmem>>, vector<1x32x32xf32>,
    %29 = vector.extract_strided_slice %8 {offsets = [0, 160], sizes = [32, 32], strides = [1, 1]} : vector<32x192xf32> to vector<32x32xf32>
    %c5 = arith.constant 5 : index
    %c0_18 = arith.constant 0 : index
    %c0_19 = arith.constant 0 : index
    %30 = vector.load %arg4[%c5, %c0_18, %c0_19] : memref<6x32x32xf32, #tpu.memory_space<vmem>>, vector<1x32x32xf32>
    %31 = vector.shape_cast %30 : vector<1x32x32xf32> to vector<32x32xf32>
    %32 = vector.shape_cast %29 : vector<32x32xf32> to vector<1x32x32xf32>
    tpu.vector_store %arg4[%c5, %c0_18, %c0_19], %32 {strides = array<i32>} : memref<6x32x32xf32, #tpu.memory_space<vmem>>, vector<1x32x32xf32>,
    return
  }
  func.func @transform_0(%arg0: i32) -> (i32, i32) {
    %c0_i32 = arith.constant 0 : i32
    %c0_i32_0 = arith.constant 0 : i32
    %c0_i32_1 = arith.constant 0 : i32
    return %c0_i32, %c0_i32_0 : i32, i32
  }
  func.func @transform_1(%arg0: i32) -> (i32, i32) {
    %c0_i32 = arith.constant 0 : i32
    %c0_i32_0 = arith.constant 0 : i32
    %c0_i32_1 = arith.constant 0 : i32
    return %c0_i32, %c0_i32_0 : i32, i32
  }
  func.func @transform_2(%arg0: i32) -> (i32, i32, i32) {
    %c0_i32 = arith.constant 0 : i32
    %c0_i32_0 = arith.constant 0 : i32
    %c0_i32_1 = arith.constant 0 : i32
    return %arg0, %c0_i32, %c0_i32_0 : i32, i32, i32
  }
  func.func @transform_3(%arg0: i32) -> (i32, i32, i32) {
    %c0_i32 = arith.constant 0 : i32
    %c0_i32_0 = arith.constant 0 : i32
    %c0_i32_1 = arith.constant 0 : i32
    return %arg0, %c0_i32, %c0_i32_0 : i32, i32, i32
  }
}

</mosaic_0001>

<bundles_post_ra>
// kernel: tpu_custom_call.1
= control target key start
LH: loop header
LB: loop body
LE: loop exit
PB: predicated region body
PF: predicated region fallthrough
CT: control target
= control target key end

     0   :  { %6 = vsyncpa [#allocation3], 0  ;;  %s287_s0 = inlined_call_operand.hbm [shape: f32[8,128], index: 0, kind: input, shape index: {}]   ;;  %s288_s1 = inlined_call_operand.hbm [shape: f32[8,128], index: 1, kind: output, shape index: {}]  }
   0x1   :  { %7 = vsyncpa [#allocation4], 0  ;;  %s270_s6 = smov 0  }
   0x2 LB: > { %s149_s7 = sadd.s32 4294967295, %s256_s6   ;;  %p150_p0 = scmp.ge.s32.totalorder %s256_s6, 1  ;;  %s256_s6 = sphi %s270_s6, %s13_s6  }
   0x3   : > { %p60_p1 = scmp.lt.s32.totalorder %s256_s6, 3  ;;  %s72_s10 = sshll.u32 %s287_s0, 4  ;;  %s73_s10 = int_to_ptr.hbm [resolvable:$true] %s72_s10 }
   0x4   : > { %p170_p3 = scmp.eq.s32.totalorder %s149_s7, 0  ;;  %s258_s11 = smov [#allocation2]  }
   0x5   : > { %p61_p2 = pnand %p150_p0, %p60_p1  ;;  %s74_s12 = sshll.u32 %s258_s11, 4  ;;  %s75_s12 = int_to_ptr.vmem [resolvable:$true] %s74_s12 }
   0x7   : > { %p166_p4 = pneg %p61_p2  ;;  %87 = sbr.rel (%p61_p2) target bundleno = 20 (0x14), region = 24 }
   0x9   : > { %p167_p5 = pnand %p170_p3, %p166_p4 }
   0xb   : > { %169 = dma.hbm_to_vmem [thread:$0]  (!%p167_p5), %s73_s10, 128, %s75_s12, [#allocation3]  }
   0xc   : > { %247 = dma.done.wait (%p170_p3), [#allocation3], 128  }
   0xd   : > { %249 = vsyncadd (%p170_p3), [#allocation3], 4294967168  ;;  %s259_s13 = smov [#allocation5]   ;;  %s109_s17 = sshll.u32 %s288_s1, 4  ;;  %v98_v0 = vld [vmem:[#allocation2] sm:$0xff]  ;;  %s110_s17 = int_to_ptr.hbm [resolvable:$true] %s109_s17 }
   0xe   : > { %s107_s14 = sshll.u32 %s259_s13, 4  ;;  %p172_p6 = scmp.eq.s32.totalorder %s149_s7, 1  ;;  %v99_v1 = vadd.f32 1.0, %v98_v0  ;;  %s108_s14 = int_to_ptr.vmem [resolvable:$true] %s107_s14 }
  0x10   : > { %100 = vst [vmem:[#allocation5] sm:$0xff] %v99_v1 }
  0x11   : > { %163 = dma.vmem_to_hbm [thread:$0]  (%p172_p6), %s108_s14, 128, %s110_s17, [#allocation4]  }
  0x12   : > { %251 = dma.done.wait (%p172_p6), [#allocation4], 128  }
  0x13   : > { %253 = vsyncadd (%p172_p6), [#allocation4], 4294967168 }
  0x14 PF: > { %s13_s6 = sadd.s32 1, %s256_s6  }
  0x15   : > { %p10_p7 = scmp.ge.s32.totalorder %s13_s6, 4  }
  0x17   :  { %12 = sbr.rel (!%p10_p7) target bundleno = 2 (0x2), region = 53 }
  0x1c   :  { %123 = vsyncpa [#allocation3], 1 }
  0x1d   :  { %125 = vsyncpa [#allocation3 + $0x1], 1 }
  0x1e   :  { %126 = vsyncpa [#allocation4], 1 }
  0x1f   :  { %128 = vsyncpa [#allocation4 + $0x1], 1 }

// kernel: subdivide.1
= control target key start
LH: loop header
LB: loop body
LE: loop exit
PB: predicated region body
PF: predicated region fallthrough
CT: control target
= control target key end

     0   :  { %8 = vsyncpa [#allocation3], 0  ;;  %s3283_s0 = inlined_call_operand.vmem [shape: f32[64,16], index: 0, kind: input, shape index: {}]   ;;  %s3284_s1 = inlined_call_operand.hbm [shape: f32[192,192], index: 1, kind: input, shape index: {}]   ;;  %s3285_s2 = inlined_call_operand.vmem [shape: f32[1,16,96], index: 2, kind: input, shape index: {}]   ;;  %s3286_s3 = inlined_call_operand.hbm [shape: f32[6,32,32], index: 3, kind: output, shape index: {}]  }
   0x1   :  { %9 = vsyncpa [#allocation4], 0  ;;  %s16_s14 = sshll.u32 %s3284_s1, 4  ;;  %s2214_s15 = smov [#allocation2]   ;;  %s17_s14 = int_to_ptr.hbm [resolvable:$true] %s16_s14 }
   0x2   :  { %s18_s16 = sshll.u32 %s2214_s15, 4  ;;  %s2215_s17 = smov 256   ;;  %s19_s16 = int_to_ptr.vmem [resolvable:$true] %s18_s16 }
   0x3   :  { %s2216_s18 = smov 16  }
   0x4   :  { %24 = dma.hbm_to_vmem [thread:$0]  %s17_s14, 6144, %s19_s16, [#allocation3], %s2215_s17, %s2215_s17, %s2216_s18  }
   0x5   :  { %2210 = dma.done.wait [#allocation3], 6144  }
   0x6   :  { %2211 = vsyncadd [#allocation3], 4294961152  ;;  %vm41_vm0 = vcmask 130048   ;;  %v32_v0 = vld [vmem:[%s3285_s2 + $0x8] sm:$0xff]  ;;  %v31_v1 = vld [vmem:[%s3285_s2] sm:$0xff]  ;;  %vm458_vm1 = vcmask 785408  }
   0x7   :  { %v33_v2 = vld [vmem:[%s3283_s0] sm:$0xff]  ;;  %v80_v3 = vand.u32 4294901760, %v32_v0  ;;  %v82_v4 = vand.u32 4294901760, %v31_v1  ;;  %v34_v6 = vld [vmem:[%s3283_s0 + $0x8] sm:$0xff]  ;;  %v35_v9 = vld [vmem:[%s3283_s0 + $0x10] sm:$0xff]  ;;  %vm511_vm2 = vcmask 523264  }
   0x8   :  { %v43_v5 = vsel %vm41_vm0, %v33_v2, 0  ;;  %v46_v8 = vsel %vm41_vm0, %v34_v6, 0  ;;  %v49_v17 = vsel %vm41_vm0, %v35_v9, 0  ;;  %v36_v27 = vld [vmem:[%s3283_s0 + $0x18] sm:$0xff]  ;;  %v37_v34 = vld [vmem:[%s3283_s0 + $0x20] sm:$0xff]  ;;  %v38_v41 = vld [vmem:[%s3283_s0 + $0x28] sm:$0xff] }
   0x9   :  { %v2259_v7 = vand.u32 4294901760, %v43_v5  ;;  %v164_v10 = vsub.f32 %v32_v0, %v80_v3  ;;  %81 = vmatpush.msra.mxu0 %v80_v3  ;;  %v170_v11 = vsub.f32 %v31_v1, %v82_v4  ;;  %284 = vmatpush.msra.mxu3 %v80_v3  ;;  %v2265_v12 = vand.u32 4294901760, %v46_v8  ;;  %v39_v48 = vld [vmem:[%s3283_s0 + $0x30] sm:$0xff]  ;;  %v40_v55 = vld [vmem:[%s3283_s0 + $0x38] sm:$0xff]  ;;  %s2217_s0 = smov 96   ;;  %s2218_s10 = smov 32  }
   0xa   :  { %v2270_v23 = vand.u32 4294901760, %v49_v17  ;;  %v52_v30 = vsel %vm41_vm0, %v36_v27, 0  ;;  %v55_v37 = vsel %vm41_vm0, %v37_v34, 0  ;;  %v58_v44 = vsel %vm41_vm0, %v38_v41, 0  ;;  %v493_v41 = vld [vmem:[#allocation2 + $0xf0] sm:$0xff]  ;;  %s2219_s11 = smov 64  }
   0xb   :  { %v85_v13 = vsub.f32 %v43_v5, %v2259_v7  ;;  %224 = vmatpush.msra.mxu2 %v164_v10  ;;  %83 = vmatpush.msra.mxu0 %v82_v4  ;;  %v165_v14 = vand.u32 4294901760, %v164_v10  ;;  %v171_v15 = vand.u32 4294901760, %v170_v11  ;;  %v93_v16 = vsub.f32 %v46_v8, %v2265_v12  ;;  %s2220_s12 = smov [#allocation5]   ;;  %s2140_s16 = sshll.u32 %s3286_s3, 4  ;;  %s2141_s16 = int_to_ptr.hbm [resolvable:$true] %s2140_s16 }
   0xc   :  { %286 = vmatpush.msra.mxu3 %v82_v4  ;;  %v101_v29 = vsub.f32 %v49_v17, %v2270_v23  ;;  %v2278_v33 = vand.u32 4294901760, %v52_v30  ;;  %v116_v40 = vand.u32 4294901760, %v55_v37  ;;  %v124_v47 = vand.u32 4294901760, %v58_v44  ;;  %s2138_s13 = sshll.u32 %s2220_s12, 4  ;;  %s2221_s17 = smov 128   ;;  %s2139_s13 = int_to_ptr.vmem [resolvable:$true] %s2138_s13 }
   0xd   :  { %v86_v18 = vand.u32 4294901760, %v85_v13  ;;  %227 = vmatpush.msra.mxu2 %v170_v11  ;;  %v166_v19 = vsub.f32 %v164_v10, %v165_v14  ;;  %353 = vmatpush.msrb.mxu0 %v165_v14  ;;  %v172_v20 = vsub.f32 %v170_v11, %v171_v15  ;;  %v94_v22 = vand.u32 4294901760, %v93_v16  ;;  %s2222_s18 = smov 8  }
   0xe   :  { %230 = vmatmul.f32.vlgmr.msra.gmra.mxu2 %v85_v13  ;;  %v102_v32 = vand.u32 4294901760, %v101_v29  ;;  %v109_v36 = vsub.f32 %v52_v30, %v2278_v33  ;;  %v117_v43 = vsub.f32 %v55_v37, %v116_v40  ;;  %v125_v50 = vsub.f32 %v58_v44, %v124_v47 }
   0xf   :  { %v87_v21 = vsub.f32 %v85_v13, %v86_v18  ;;  %290 = vmatmul.f32.vlgmr.msra.gmra.mxu3 %v86_v18  ;;  %v167_v24 = vand.u32 4294901760, %v166_v19  ;;  %v173_v25 = vand.u32 4294901760, %v172_v20  ;;  %357 = vmatpush.msrb.mxu0 %v171_v15  ;;  %v95_v28 = vsub.f32 %v93_v16, %v94_v22 }
  0x10   :  { %v103_v35 = vsub.f32 %v101_v29, %v102_v32  ;;  %v110_v39 = vand.u32 4294901760, %v109_v36  ;;  %v118_v46 = vand.u32 4294901760, %v117_v43  ;;  %v61_v51 = vsel %vm41_vm0, %v39_v48, 0  ;;  %v487_v48 = vld [vmem:[#allocation2 + $0xc0] sm:$0xff] }
  0x11   :  { %v88_v26 = vand.u32 4294901760, %v87_v21  ;;  %168 = vmatpush.msra.mxu1 %v167_v24  ;;  %v96_v31 = vand.u32 4294901760, %v95_v28  ;;  %v126_v53 = vand.u32 4294901760, %v125_v50  ;;  %v132_v54 = vand.u32 4294901760, %v61_v51 }
  0x12   :  { %v104_v38 = vand.u32 4294901760, %v103_v35  ;;  %v111_v42 = vsub.f32 %v109_v36, %v110_v39  ;;  %v119_v49 = vsub.f32 %v117_v43, %v118_v46  ;;  %v64_v58 = vsel %vm41_vm0, %v40_v55, 0  ;;  %v481_v55 = vld [vmem:[#allocation2 + $0x90] sm:$0xff] }
  0x13   :  { %89 = vmatmul.f32.vlgmr.msra.gmra.mxu0 %v88_v26  ;;  %174 = vmatpush.msra.mxu1 %v173_v25  ;;  %v127_v56 = vsub.f32 %v125_v50, %v126_v53  ;;  %v133_v57 = vsub.f32 %v61_v51, %v132_v54  ;;  %v140_v61 = vand.u32 4294901760, %v64_v58  ;;  %vm2048_vm3 = vcmask 261120  }
  0x14   :  { %176 = vmatmul.f32.vlgmr.msra.gmra.mxu1 %v2259_v7  ;;  %v112_v45 = vand.u32 4294901760, %v111_v42  ;;  %v120_v52 = vand.u32 4294901760, %v119_v49  ;;  %v491_v42 = vld [vmem:[#allocation2 + $0xe0] sm:$0xff]  ;;  %v485_v49 = vld [vmem:[#allocation2 + $0xb0] sm:$0xff] }
  0x15   :  { %406 = vmatpush.msrb.mxu1 %v80_v3  ;;  %v128_v59 = vand.u32 4294901760, %v127_v56  ;;  %v134_v60 = vand.u32 4294901760, %v133_v57  ;;  %v141_v63 = vsub.f32 %v64_v58, %v140_v61 }
  0x16   :  { %235 = vmatmul.f32.gmra.mxu2 %v93_v16 }
  0x17   :  { %296 = vmatmul.f32.gmra.mxu3 %v94_v22  ;;  %408 = vmatpush.msrb.mxu1 %v82_v4  ;;  %v135_v62 = vsub.f32 %v133_v57, %v134_v60  ;;  %v142_v1 = vand.u32 4294901760, %v141_v63 }
  0x19   :  { %v136_v0 = vand.u32 4294901760, %v135_v62  ;;  %v143_v2 = vsub.f32 %v141_v63, %v142_v1 }
  0x1b   :  { %97 = vmatmul.f32.gmra.mxu0 %v96_v31  ;;  %v144_v3 = vand.u32 4294901760, %v143_v2 }
  0x1c   :  { %180 = vmatmul.f32.gmra.mxu1 %v2265_v12 }
  0x1e   :  { %240 = vmatmul.f32.gmra.mxu2 %v101_v29 }
  0x1f   :  { %302 = vmatmul.f32.gmra.mxu3 %v102_v32 }
  0x23   :  { %105 = vmatmul.f32.gmra.mxu0 %v104_v38 }
  0x24   :  { %184 = vmatmul.f32.gmra.mxu1 %v2270_v23 }
  0x26   :  { %245 = vmatmul.f32.gmra.mxu2 %v109_v36 }
  0x27   :  { %308 = vmatmul.f32.gmra.mxu3 %v110_v39 }
  0x2b   :  { %113 = vmatmul.f32.gmra.mxu0 %v112_v45  ;;  %v2364_v45 = vand.u32 4294901760, %v493_v41 }
  0x2c   :  { %188 = vmatmul.f32.gmra.mxu1 %v2278_v33 }
  0x2d   :  { %521 = vmatpush.msrb.mxu2 %v2364_v45  ;;  %v2378_v58 = vsub.f32 %v493_v41, %v2364_v45  ;;  %906 = vmatpush.msra.mxu1 %v2364_v45 }
  0x2e   :  { %250 = vmatmul.f32.gmra.mxu2 %v117_v43  ;;  %v489_v43 = vld [vmem:[#allocation2 + $0xd0] sm:$0xff] }
  0x2f   :  { %314 = vmatmul.f32.gmra.mxu3 %v118_v46  ;;  %v2366_v46 = vand.u32 4294901760, %v491_v42 }
  0x31   :  { %523 = vmatpush.msrb.mxu2 %v2366_v46  ;;  %908 = vmatpush.msra.mxu1 %v2366_v46 }
  0x33   :  { %121 = vmatmul.f32.gmra.mxu0 %v120_v52  ;;  %v2370_v52 = vand.u32 4294901760, %v487_v48 }
  0x34   :  { %192 = vmatmul.f32.gmra.mxu1 %v116_v40 }
  0x36   :  { %255 = vmatmul.f32.gmra.mxu2 %v125_v50  ;;  %v483_v50 = vld [vmem:[#allocation2 + $0xa0] sm:$0xff] }
  0x37   :  { %320 = vmatmul.f32.gmra.mxu3 %v126_v53  ;;  %v2372_v53 = vand.u32 4294901760, %v485_v49 }
  0x3b   :  { %129 = vmatmul.f32.gmra.mxu0 %v128_v59  ;;  %v2381_v59 = vsub.f32 %v491_v42, %v2366_v46 }
  0x3c   :  { %196 = vmatmul.f32.gmra.mxu1 %v124_v47 }
  0x3e   :  { %260 = vmatmul.f32.gmra.mxu2 %v133_v57 }
  0x3f   :  { %326 = vmatmul.f32.gmra.mxu3 %v134_v60 }
  0x43   :  { %137 = vmatmul.f32.gmra.mxu0 %v136_v0  ;;  %v2393_v0 = vsub.f32 %v485_v49, %v2372_v53  ;;  %v477_v49 = vld [vmem:[#allocation2 + $0x70] sm:$0xff] }
  0x44   :  { %200 = vmatmul.f32.gmra.mxu1 %v132_v54 }
  0x46   :  { %265 = vmatmul.f32.gmra.mxu2 %v141_v63  ;;  %v2390_v63 = vsub.f32 %v487_v48, %v2370_v52 }
  0x47   :  { %332 = vmatmul.f32.gmra.mxu3 %v142_v1 }
  0x4b   :  { %145 = vmatmul.f32.gmra.mxu0 %v144_v3 }
  0x4c   :  { %204 = vmatmul.f32.gmra.mxu1 %v140_v61 }
  0x53   :  { %359 = vmatmul.f32.vlgmr.msrb.gmra.mxu0 %v2259_v7 }
  0x54   :  { %410 = vmatmul.f32.vlgmr.msrb.gmra.mxu1 %v2259_v7 }
  0x5b   :  { %363 = vmatmul.f32.gmra.mxu0 %v2265_v12 }
  0x5c   :  { %414 = vmatmul.f32.gmra.mxu1 %v2265_v12 }
  0x63   :  { %367 = vmatmul.f32.gmra.mxu0 %v2270_v23 }
  0x64   :  { %418 = vmatmul.f32.gmra.mxu1 %v2270_v23 }
  0x6b   :  { %371 = vmatmul.f32.gmra.mxu0 %v2278_v33 }
  0x6c   :  { %422 = vmatmul.f32.gmra.mxu1 %v2278_v33 }
  0x73   :  { %375 = vmatmul.f32.gmra.mxu0 %v116_v40 }
  0x74   :  { %426 = vmatmul.f32.gmra.mxu1 %v116_v40 }
  0x7b   :  { %379 = vmatmul.f32.gmra.mxu0 %v124_v47 }
  0x7c   :  { %430 = vmatmul.f32.gmra.mxu1 %v124_v47  ;;  %v2368_v47 = vand.u32 4294901760, %v489_v43 }
  0x7e   :  { %v2384_v60 = vsub.f32 %v489_v43, %v2368_v47  ;;  %525 = vmatpush.msrb.mxu2 %v2368_v47  ;;  %910 = vmatpush.msra.mxu1 %v2368_v47 }
  0x80   :  { %527 = vmatpush.msrb.mxu2 %v2370_v52  ;;  %912 = vmatpush.msra.mxu1 %v2370_v52 }
  0x82   :  { %529 = vmatpush.msrb.mxu2 %v2372_v53  ;;  %914 = vmatpush.msra.mxu1 %v2372_v53 }
  0x83   :  { %383 = vmatmul.f32.gmra.mxu0 %v132_v54 }
  0x84   :  { %434 = vmatmul.f32.gmra.mxu1 %v132_v54  ;;  %v2374_v54 = vand.u32 4294901760, %v483_v50 }
  0x86   :  { %v2396_v1 = vsub.f32 %v483_v50, %v2374_v54  ;;  %v475_v50 = vld [vmem:[#allocation2 + $0x60] sm:$0xff]  ;;  %531 = vmatpush.msrb.mxu2 %v2374_v54  ;;  %916 = vmatpush.msra.mxu1 %v2374_v54 }
  0x8b   :  { %387 = vmatmul.f32.gmra.mxu0 %v140_v61 }
  0x8c   :  { %438 = vmatmul.f32.gmra.mxu1 %v140_v61  ;;  %v2386_v61 = vand.u32 4294901760, %v481_v55 }
  0x8e   :  { %533 = vmatpush.msrb.mxu2 %v2386_v61  ;;  %918 = vmatpush.msra.mxu1 %v2386_v61 }
  0x90   :  { %v2308_v4 = vpop.f32.mrf.mxu0 }
  0x91   :  { %v2310_v5 = vpop.f32.mrf.mxu1  ;;  %v2324_v15 = vpop.f32.mrf.mxu2 }
  0x92   :  { %v2326_v17 = vpop.f32.mrf.mxu3 }
  0x98   :  { %v2312_v6 = vpop.f32.mrf.mxu0 }
  0x99   :  { %v2314_v7 = vpop.f32.mrf.mxu1  ;;  %v2332_v20 = vpop.f32.mrf.mxu2 }
  0x9a   :  { %v2334_v21 = vpop.f32.mrf.mxu3 }
  0xa0   :  { %v2316_v8 = vpop.f32.mrf.mxu0 }
  0xa1   :  { %v2318_v9 = vpop.f32.mrf.mxu1  ;;  %v2340_v24 = vpop.f32.mrf.mxu2 }
  0xa2   :  { %v2344_v26 = vpop.f32.mrf.mxu3 }
  0xa3   :  { %3339 = vst [vmem:[#allocation9_spill] sm:$0xff] %v2344_v26 }
  0xa8   :  { %v2320_v10 = vpop.f32.mrf.mxu0 }
  0xa9   :  { %v2322_v11 = vpop.f32.mrf.mxu1  ;;  %v2348_v28 = vpop.f32.mrf.mxu2 }
  0xaa   :  { %3338 = vst [vmem:[#allocation8_spill] sm:$0xff] %v2322_v11  ;;  %v2354_v31 = vpop.f32.mrf.mxu3 }
  0xab   :  { %3340 = vst [vmem:[#allocation10_spill] sm:$0xff] %v2348_v28 }
  0xac   :  { %3343 = vst [vmem:[#allocation13_spill] sm:$0xff] %v2354_v31 }
  0xb0   :  { %v122_v12 = vpop.f32.mrf.mxu0 }
  0xb1   :  { %v193_v13 = vpop.f32.mrf.mxu1  ;;  %v251_v33 = vpop.f32.mrf.mxu2 }
  0xb2   :  { %v315_v35 = vpop.f32.mrf.mxu3  ;;  %v194_v36 = vadd.f32 %v193_v13, %v122_v12  ;;  %v587_v12 = vand.u32 4294901760, %v2378_v58  ;;  %v593_v13 = vand.u32 4294901760, %v2381_v59 }
  0xb4   :  { %v252_v39 = vadd.f32 %v251_v33, %v194_v36  ;;  %v611_v36 = vand.u32 4294901760, %v2393_v0  ;;  %v594_v41 = vsub.f32 %v2381_v59, %v593_v13  ;;  %827 = vmatpush.msra.mxu0 %v587_v12 }
  0xb6   :  { %v316_v51 = vadd.f32 %v315_v35, %v252_v39  ;;  %v605_v35 = vand.u32 4294901760, %v2390_v63  ;;  %v2406_v39 = vsub.f32 %v481_v55, %v2386_v61  ;;  %831 = vmatpush.msra.mxu0 %v593_v13  ;;  %v2430_v13 = vand.u32 4294901760, %v475_v50 }
  0xb8   :  { %v130_v14 = vpop.f32.mrf.mxu0  ;;  %v606_v43 = vsub.f32 %v2390_v63, %v605_v35  ;;  %v2442_v28 = vsub.f32 %v475_v50, %v2430_v13 }
  0xb9   :  { %v197_v16 = vpop.f32.mrf.mxu1  ;;  %v256_v40 = vpop.f32.mrf.mxu2 }
  0xba   :  { %v198_v44 = vadd.f32 %v197_v16, %v130_v14  ;;  %v321_v56 = vpop.f32.mrf.mxu3  ;;  %v599_v14 = vand.u32 4294901760, %v2384_v60  ;;  %v479_v16 = vld [vmem:[#allocation2 + $0x80] sm:$0xff] }
  0xbb   :  { %v2415_v48 = vand.u32 4294901760, %v479_v16 }
  0xbc   :  { %v257_v2 = vadd.f32 %v256_v40, %v198_v44  ;;  %v588_v40 = vsub.f32 %v2378_v58, %v587_v12  ;;  %v600_v42 = vsub.f32 %v2384_v60, %v599_v14  ;;  %v617_v44 = vand.u32 4294901760, %v2396_v1  ;;  %835 = vmatpush.msra.mxu0 %v599_v14 }
  0xbd   :  { %535 = vmatpush.msrb.mxu2 %v2415_v48  ;;  %920 = vmatpush.msra.mxu1 %v2415_v48 }
  0xbe   :  { %v322_v55 = vadd.f32 %v321_v56, %v257_v2  ;;  %v601_v2 = vand.u32 4294901760, %v600_v42  ;;  %v618_v31 = vsub.f32 %v2396_v1, %v617_v44  ;;  %839 = vmatpush.msra.mxu0 %v605_v35 }
  0xc0   :  { %v2328_v18 = vpop.f32.mrf.mxu0  ;;  %843 = vmatpush.msra.mxu0 %v611_v36 }
  0xc1   :  { %v2330_v19 = vpop.f32.mrf.mxu1 }
  0xc2   :  { %v202_v12 = vadd.f32 %v2330_v19, %v2328_v18  ;;  %847 = vmatpush.msra.mxu0 %v617_v44 }
  0xc8   :  { %v2336_v22 = vpop.f32.mrf.mxu0 }
  0xc9   :  { %v2338_v23 = vpop.f32.mrf.mxu1 }
  0xd0   :  { %v2342_v25 = vpop.f32.mrf.mxu0 }
  0xd1   :  { %v2346_v27 = vpop.f32.mrf.mxu1 }
  0xd8   :  { %v2350_v29 = vpop.f32.mrf.mxu0 }
  0xd9   :  { %3341 = vst [vmem:[#allocation11_spill] sm:$0xff] %v2350_v29  ;;  %v2352_v30 = vpop.f32.mrf.mxu1 }
  0xda   :  { %3342 = vst [vmem:[#allocation12_spill] sm:$0xff] %v2352_v30 }
  0xe0   :  { %v2356_v32 = vpop.f32.mrf.mxu0 }
  0xe1   :  { %3344 = vst [vmem:[#allocation14_spill] sm:$0xff] %v2356_v32  ;;  %v2358_v34 = vpop.f32.mrf.mxu1  ;;  %v327_v32 = vpop.f32.mrf.mxu3 }
  0xe2   :  { %3345 = vst [vmem:[#allocation15_spill] sm:$0xff] %v2358_v34  ;;  %v471_v34 = vld [vmem:[#allocation2 + $0x40] sm:$0xff] }
  0xe8   :  { %v2360_v37 = vpop.f32.mrf.mxu0 }
  0xe9   :  { %3346 = vst [vmem:[#allocation16_spill] sm:$0xff] %v2360_v37  ;;  %v2362_v38 = vpop.f32.mrf.mxu1  ;;  %v2424_v37 = vsub.f32 %v479_v16, %v2415_v48  ;;  %v469_v16 = vld [vmem:[#allocation2 + $0x30] sm:$0xff] }
  0xea   :  { %3347 = vst [vmem:[#allocation17_spill] sm:$0xff] %v2362_v38  ;;  %v623_v38 = vand.u32 4294901760, %v2406_v39  ;;  %v2453_v50 = vand.u32 4294901760, %v469_v16 }
  0xeb   :  { %v629_v42 = vand.u32 4294901760, %v2424_v37 }
  0xec   :  { %851 = vmatpush.msra.mxu0 %v623_v38 }
  0xed   :  { %v630_v35 = vsub.f32 %v2424_v37, %v629_v42 }
  0xee   :  { %855 = vmatpush.msra.mxu0 %v629_v42 }
  0xf0   :  { %v376_v57 = vpop.f32.mrf.mxu0 }
  0xf1   :  { %v377_v62 = vadd.f32 %v376_v57, %v316_v51  ;;  %v427_v3 = vpop.f32.mrf.mxu1  ;;  %v473_v51 = vld [vmem:[#allocation2 + $0x50] sm:$0xff]  ;;  %v261_v57 = vpop.f32.mrf.mxu2 }
  0xf2   :  { %v2432_v18 = vand.u32 4294901760, %v473_v51 }
  0xf3   :  { %v428_v33 = vadd.f32 %v427_v3, %v377_v62  ;;  %v589_v62 = vand.u32 4294901760, %v588_v40  ;;  %v595_v3 = vand.u32 4294901760, %v594_v41  ;;  %v2428_v40 = vand.u32 4294901760, %v477_v49 }
  0xf4   :  { %v607_v41 = vand.u32 4294901760, %v606_v43  ;;  %v2444_v43 = vand.u32 4294901760, %v471_v34  ;;  %v2451_v29 = vsub.f32 %v473_v51, %v2432_v18 }
  0xf5   :  { %446 = vrot.lane.b32.xlu0 %v428_v33, %s2217_s0  ;;  %v612_v33 = vsub.f32 %v2393_v0, %v611_v36  ;;  %590 = vmatpush.msrb.mxu3 %v589_v62  ;;  %v2439_v62 = vsub.f32 %v477_v49, %v2428_v40 }
  0xf6   :  { %537 = vmatpush.msrb.mxu2 %v2428_v40  ;;  %922 = vmatpush.msra.mxu1 %v2428_v40 }
  0xf7   :  { %596 = vmatpush.msrb.mxu3 %v595_v3  ;;  %v467_v3 = vld [vmem:[#allocation2 + $0x20] sm:$0xff]  ;;  %v613_v26 = vand.u32 4294901760, %v612_v33  ;;  %v635_v49 = vand.u32 4294901760, %v2439_v62 }
  0xf8   :  { %v380_v56 = vpop.f32.mrf.mxu0  ;;  %v2462_v33 = vand.u32 4294901760, %v467_v3  ;;  %539 = vmatpush.msrb.mxu2 %v2430_v13  ;;  %924 = vmatpush.msra.mxu1 %v2430_v13 }
  0xf9   :  { %v381_v19 = vadd.f32 %v380_v56, %v322_v55  ;;  %v431_v30 = vpop.f32.mrf.mxu1  ;;  %v262_v55 = vadd.f32 %v261_v57, %v202_v12  ;;  %v624_v56 = vsub.f32 %v2406_v39, %v623_v38  ;;  %602 = vmatpush.msrb.mxu3 %v601_v2  ;;  %v641_v57 = vand.u32 4294901760, %v2442_v28  ;;  %v333_v38 = vpop.f32.mrf.mxu3  ;;  %859 = vmatpush.msra.mxu0 %v635_v49 }
  0xfa   :  { %v2460_v12 = vsub.f32 %v471_v34, %v2444_v43  ;;  %v206_v2 = vadd.f32 %v2338_v23, %v2336_v22  ;;  %v647_v34 = vand.u32 4294901760, %v2451_v29  ;;  %v631_v23 = vand.u32 4294901760, %v630_v35  ;;  %541 = vmatpush.msrb.mxu2 %v2432_v18  ;;  %926 = vmatpush.msra.mxu1 %v2432_v18 }
  0xfb   :  { %v432_v14 = vadd.f32 %v431_v30, %v381_v19  ;;  %v619_v30 = vand.u32 4294901760, %v618_v31  ;;  %608 = vmatpush.msrb.mxu3 %v607_v41  ;;  %v328_v51 = vadd.f32 %v327_v32, %v262_v55  ;;  %v266_v31 = vpop.f32.mrf.mxu2  ;;  %v625_v19 = vand.u32 4294901760, %v624_v56  ;;  %863 = vmatpush.msra.mxu0 %v641_v57 }
  0xfc   :  { %v636_v41 = vsub.f32 %v2439_v62, %v635_v49  ;;  %v653_v44 = vand.u32 4294901760, %v2460_v12  ;;  %v2478_v55 = vsub.f32 %v467_v3, %v2462_v33  ;;  %v267_v56 = vadd.f32 %v266_v31, %v206_v2  ;;  %543 = vmatpush.msrb.mxu2 %v2444_v43  ;;  %928 = vmatpush.msra.mxu1 %v2444_v43 }
  0xfd   :  { %448 = vrot.lane.b32.xlu0 %v432_v14, %s2217_s0  ;;  %614 = vmatpush.msrb.mxu3 %v613_v26  ;;  %v2471_v14 = vsub.f32 %v469_v16, %v2453_v50  ;;  %v642_v26 = vsub.f32 %v2442_v28, %v641_v57 }
  0xfe   :  { %v637_v16 = vand.u32 4294901760, %v636_v41  ;;  %v654_v42 = vsub.f32 %v2460_v12, %v653_v44  ;;  %v334_v2 = vadd.f32 %v333_v38, %v267_v56  ;;  %867 = vmatpush.msra.mxu0 %v647_v34  ;;  %545 = vmatpush.msrb.mxu2 %v2453_v50 }
  0xff   :  { %620 = vmatpush.msrb.mxu3 %v619_v30  ;;  %v648_v30 = vsub.f32 %v2451_v29, %v647_v34  ;;  %v659_v35 = vand.u32 4294901760, %v2471_v14  ;;  %v643_v3 = vand.u32 4294901760, %v642_v26  ;;  %930 = vmatpush.msra.mxu1 %v2453_v50 }
 0x100   :  { %v384_v36 = vpop.f32.mrf.mxu0  ;;  %v655_v41 = vand.u32 4294901760, %v654_v42  ;;  %871 = vmatpush.msra.mxu0 %v653_v44  ;;  %547 = vmatpush.msrb.mxu2 %v2462_v33  ;;  %v463_v44 = vld [vmem:[#allocation2] sm:$0xff] }
 0x101   :  { %v385_v32 = vadd.f32 %v384_v36, %v328_v51  ;;  %v435_v22 = vpop.f32.mrf.mxu1  ;;  %626 = vmatpush.msrb.mxu3 %v625_v19  ;;  %v665_v51 = vand.u32 4294901760, %v2478_v55  ;;  %v649_v36 = vand.u32 4294901760, %v648_v30  ;;  %932 = vmatpush.msra.mxu1 %v2462_v33  ;;  %v2502_v38 = vand.u32 4294901760, %v463_v44 }
 0x102   :  { %875 = vmatpush.msra.mxu0 %v659_v35 }
 0x103   :  { %v436_v11 = vadd.f32 %v435_v22, %v385_v32  ;;  %632 = vmatpush.msrb.mxu3 %v631_v23  ;;  %v666_v57 = vsub.f32 %v2478_v55, %v665_v51  ;;  %v465_v23 = vld [vmem:[#allocation2 + $0x10] sm:$0xff]  ;;  %v2506_v30 = vsub.f32 %v463_v44, %v2502_v38 }
 0x104   :  { %879 = vmatpush.msra.mxu0 %v665_v51  ;;  %v2498_v26 = vand.u32 4294901760, %v465_v23 }
 0x105   :  { %450 = vrot.lane.b32.xlu1 %v436_v11, %s2217_s0  ;;  %638 = vmatpush.msrb.mxu3 %v637_v16  ;;  %v660_v11 = vsub.f32 %v2471_v14, %v659_v35  ;;  %v667_v34 = vand.u32 4294901760, %v666_v57  ;;  %v488_v57 = vld [vmem:[#allocation2 + $0xc8] sm:$0xff] }
 0x106   :  { %v670_v56 = vsub.f32 %v465_v23, %v2498_v26  ;;  %934 = vmatpush.msra.mxu1 %v2498_v26  ;;  %549 = vmatpush.msrb.mxu2 %v2498_v26  ;;  %v2640_v44 = vand.u32 4294901760, %v488_v57 }
 0x107   :  { %644 = vmatpush.msrb.mxu3 %v643_v3  ;;  %v661_v22 = vand.u32 4294901760, %v660_v11  ;;  %v677_v3 = vand.u32 4294901760, %v2506_v30 }
 0x108   :  { %v388_v31 = vpop.f32.mrf.mxu0  ;;  %v671_v16 = vand.u32 4294901760, %v670_v56  ;;  %936 = vmatpush.msra.mxu1 %v2502_v38  ;;  %551 = vmatpush.msrb.mxu2 %v2502_v38 }
 0x109   :  { %v389_v49 = vadd.f32 %v388_v31, %v334_v2  ;;  %v439_v19 = vpop.f32.mrf.mxu1  ;;  %650 = vmatpush.msrb.mxu3 %v649_v36  ;;  %v678_v51 = vsub.f32 %v2506_v30, %v677_v3 }
 0x10a   :  { %700 = vmatpush.msra.mxu2 %v2378_v58  ;;  %v672_v35 = vsub.f32 %v670_v56, %v671_v16  ;;  %883 = vmatpush.msra.mxu0 %v671_v16  ;;  %v503_v58 = vld [vmem:[#allocation2 + $0x140] sm:$0xff]  ;;  %v3352_v16 = vld [vmem:[#allocation9_spill] sm:$0xff] }
 0x10b   :  { %v440_v32 = vadd.f32 %v439_v19, %v389_v49  ;;  %656 = vmatpush.msrb.mxu3 %v655_v41  ;;  %v679_v2 = vand.u32 4294901760, %v678_v51 }
 0x10c   :  { %703 = vmatpush.msra.mxu2 %v2381_v59  ;;  %v673_v42 = vand.u32 4294901760, %v672_v35  ;;  %887 = vmatpush.msra.mxu0 %v677_v3  ;;  %v2561_v59 = vand.u32 4294901760, %v503_v58 }
 0x10d   :  { %452 = vrot.lane.b32.xlu1 %v440_v32, %s2217_s0  ;;  %662 = vmatpush.msrb.mxu3 %v661_v22  ;;  %v3350_v32 = vld [vmem:[#allocation11_spill] sm:$0xff] }
 0x10e   :  { %706 = vmatpush.msra.mxu2 %v2384_v60 }
 0x10f   :  { %668 = vmatpush.msrb.mxu3 %v667_v34 }
 0x110   :  { %709 = vmatpush.msra.mxu2 %v2390_v63 }
 0x111   :  { %674 = vmatpush.msrb.mxu3 %v673_v42  ;;  %v3353_v42 = vld [vmem:[#allocation10_spill] sm:$0xff] }
 0x112   :  { %712 = vmatpush.msra.mxu2 %v2393_v0 }
 0x113   :  { %680 = vmatpush.msrb.mxu3 %v679_v2 }
 0x114   :  { %715 = vmatpush.msra.mxu2 %v2396_v1  ;;  %v494_v1 = vld [vmem:[#allocation2 + $0xf8] sm:$0xff] }
 0x115   :  { %768 = vmatpush.msra.mxu3 %v2364_v45  ;;  %v178_v45 = vadd.f32 %v2310_v5, %v2308_v4  ;;  %v505_v4 = vld [vmem:[#allocation2 + $0x150] sm:$0xff] }
 0x116   :  { %718 = vmatpush.msra.mxu2 %v2406_v39  ;;  %v186_v39 = vadd.f32 %v2318_v9, %v2316_v8 }
 0x117   :  { %770 = vmatpush.msra.mxu3 %v2366_v46  ;;  %v509_v46 = vld [vmem:[#allocation2 + $0x170] sm:$0xff] }
 0x118   :  { %721 = vmatpush.msra.mxu2 %v2424_v37  ;;  %v507_v37 = vld [vmem:[#allocation2 + $0x160] sm:$0xff] }
 0x119   :  { %772 = vmatpush.msra.mxu3 %v2368_v47  ;;  %v2533_v47 = vand.u32 4294901760, %v509_v46 }
 0x11a   :  { %724 = vmatpush.msra.mxu2 %v2439_v62 }
 0x11b   :  { %774 = vmatpush.msra.mxu3 %v2370_v52  ;;  %v2538_v52 = vsub.f32 %v509_v46, %v2533_v47  ;;  %1146 = vmatpush.msrb.mxu1 %v2533_v47 }
 0x11c   :  { %727 = vmatpush.msra.mxu2 %v2442_v28  ;;  %v2541_v28 = vand.u32 4294901760, %v507_v37 }
 0x11d   :  { %776 = vmatpush.msra.mxu3 %v2372_v53  ;;  %1094 = vmatpush.msrb.mxu0 %v2538_v52  ;;  %v2550_v53 = vand.u32 4294901760, %v505_v4 }
 0x11e   :  { %730 = vmatpush.msra.mxu2 %v2451_v29  ;;  %v232_v29 = vadd.f32 %v2324_v15, %v178_v45  ;;  %v2548_v5 = vsub.f32 %v507_v37, %v2541_v28  ;;  %1148 = vmatpush.msrb.mxu1 %v2541_v28  ;;  %v2656_v45 = vsub.f32 %v488_v57, %v2640_v44  ;;  %v484_v37 = vld [vmem:[#allocation2 + $0xa8] sm:$0xff] }
 0x11f   :  { %778 = vmatpush.msra.mxu3 %v2374_v54  ;;  %v182_v54 = vadd.f32 %v2314_v7, %v2312_v6  ;;  %v2559_v15 = vsub.f32 %v505_v4, %v2550_v53  ;;  %v2568_v6 = vsub.f32 %v503_v58, %v2561_v59 }
 0x120   :  { %733 = vmatpush.msra.mxu2 %v2460_v12  ;;  %1097 = vmatpush.msrb.mxu0 %v2548_v5  ;;  %v292_v60 = vadd.f32 %v2326_v17, %v232_v29  ;;  %v499_v17 = vld [vmem:[#allocation2 + $0x120] sm:$0xff] }
 0x121   :  { %780 = vmatpush.msra.mxu3 %v2386_v61  ;;  %1150 = vmatpush.msrb.mxu1 %v2550_v53  ;;  %v501_v61 = vld [vmem:[#allocation2 + $0x130] sm:$0xff]  ;;  %v237_v63 = vadd.f32 %v2332_v20, %v182_v54  ;;  %v2585_v20 = vand.u32 4294901760, %v494_v1  ;;  %v3354_v29 = vld [vmem:[#allocation12_spill] sm:$0xff] }
 0x122   :  { %736 = vmatpush.msra.mxu2 %v2471_v14  ;;  %1100 = vmatpush.msrb.mxu0 %v2559_v15  ;;  %v2570_v7 = vand.u32 4294901760, %v501_v61  ;;  %v361_v0 = vadd.f32 %v2342_v25, %v292_v60  ;;  %v497_v25 = vld [vmem:[#allocation2 + $0x110] sm:$0xff]  ;;  %v2668_v60 = vand.u32 4294901760, %v484_v37 }
 0x123   :  { %782 = vmatpush.msra.mxu3 %v2415_v48  ;;  %1152 = vmatpush.msrb.mxu1 %v2561_v59  ;;  %v2593_v9 = vand.u32 4294901760, %v497_v25 }
 0x124   :  { %739 = vmatpush.msra.mxu2 %v2478_v55  ;;  %1103 = vmatpush.msrb.mxu0 %v2568_v6  ;;  %v2581_v48 = vsub.f32 %v501_v61, %v2570_v7  ;;  %v412_v12 = vadd.f32 %v2346_v27, %v361_v0  ;;  %v490_v55 = vld [vmem:[#allocation2 + $0xd8] sm:$0xff]  ;;  %v3349_v27 = vld [vmem:[#allocation8_spill] sm:$0xff]  ;;  %v3355_v61 = vld [vmem:[#allocation14_spill] sm:$0xff] }
 0x125   :  { %784 = vmatpush.msra.mxu3 %v2428_v40  ;;  %v2583_v40 = vand.u32 4294901760, %v499_v17  ;;  %1154 = vmatpush.msrb.mxu1 %v2570_v7  ;;  %v2611_v36 = vsub.f32 %v497_v25, %v2593_v9  ;;  %v2614_v11 = vand.u32 4294901760, %v490_v55  ;;  %v190_v49 = vadd.f32 %v3349_v27, %v2320_v10 }
 0x126   :  { %742 = vmatpush.msra.mxu2 %v670_v56  ;;  %1106 = vmatpush.msrb.mxu0 %v2581_v48  ;;  %v486_v56 = vld [vmem:[#allocation2 + $0xb8] sm:$0xff] }
 0x127   :  { %786 = vmatpush.msra.mxu3 %v2430_v13  ;;  %v495_v13 = vld [vmem:[#allocation2 + $0x100] sm:$0xff]  ;;  %v2591_v8 = vsub.f32 %v499_v17, %v2583_v40  ;;  %1156 = vmatpush.msrb.mxu1 %v2583_v40  ;;  %3348 = vst [vmem:[#allocation18_spill] sm:$0xff] %v2611_v36  ;;  %v2636_v23 = vsub.f32 %v490_v55, %v2614_v11  ;;  %v2658_v46 = vand.u32 4294901760, %v486_v56  ;;  %v3290_v17 = vand.u32 4294901760, %v2656_v45 }
 0x128   :  { %745 = vmatpush.msra.mxu2 %v2506_v30  ;;  %v2595_v62 = vand.u32 4294901760, %v495_v13  ;;  %v247_v51 = vadd.f32 %v3353_v42, %v190_v49  ;;  %v480_v49 = vld [vmem:[#allocation2 + $0x88] sm:$0xff]  ;;  %v478_v42 = vld [vmem:[#allocation2 + $0x78] sm:$0xff] }
 0x129   :  { %788 = vmatpush.msra.mxu3 %v2432_v18  ;;  %v492_v18 = vld [vmem:[#allocation2 + $0xe8] sm:$0xff]  ;;  %1109 = vmatpush.msrb.mxu0 %v2591_v8  ;;  %v3291_v3 = vand.u32 4294901760, %v2636_v23 }
 0x12a   :  { %v2603_v14 = vand.u32 4294901760, %v492_v18  ;;  %1158 = vmatpush.msrb.mxu1 %v2593_v9 }
 0x12b   :  { %790 = vmatpush.msra.mxu3 %v2444_v43  ;;  %v2598_v43 = vsub.f32 %v494_v1, %v2585_v20  ;;  %1112 = vmatpush.msrb.mxu0 %v2611_v36  ;;  %v1364_v58 = vsub.f32 %v2636_v23, %v3291_v3  ;;  %v2673_v1 = vsub.f32 %v486_v56, %v2658_v46 }
 0x12c   :  { %v2625_v41 = vsub.f32 %v492_v18, %v2603_v14  ;;  %1160 = vmatpush.msrb.mxu1 %v2595_v62 }
 0x12d   :  { %792 = vmatpush.msra.mxu3 %v2453_v50  ;;  %v298_v50 = vadd.f32 %v2334_v21, %v237_v63  ;;  %v3295_v21 = vand.u32 4294901760, %v2598_v43  ;;  %v1365_v18 = vand.u32 4294901760, %v1364_v58  ;;  %v3288_v27 = vand.u32 4294901760, %v2673_v1 }
 0x12f   :  { %794 = vmatpush.msra.mxu3 %v2462_v33  ;;  %v242_v33 = vadd.f32 %v2340_v24, %v186_v39  ;;  %v2622_v24 = vsub.f32 %v495_v13, %v2595_v62  ;;  %v365_v22 = vadd.f32 %v3350_v32, %v298_v50  ;;  %v1352_v10 = vsub.f32 %v2598_v43, %v3295_v21  ;;  %v482_v39 = vld [vmem:[#allocation2 + $0x98] sm:$0xff] }
 0x130   :  { %v2681_v50 = vsub.f32 %v484_v37, %v2668_v60 }
 0x131   :  { %796 = vmatpush.msra.mxu3 %v2498_v26  ;;  %v3293_v26 = vand.u32 4294901760, %v2625_v41  ;;  %v304_v30 = vadd.f32 %v3352_v16, %v242_v33  ;;  %1115 = vmatpush.msrb.mxu0 %v2622_v24  ;;  %v416_v4 = vadd.f32 %v3354_v29, %v365_v22  ;;  %v1370_v33 = vsub.f32 %v2656_v45, %v3290_v17  ;;  %v3366_v17 = vld [vmem:[#allocation16_spill] sm:$0xff] }
 0x132   :  { %v1376_v16 = vsub.f32 %v2673_v1, %v3288_v27 }
 0x133   :  { %798 = vmatpush.msra.mxu3 %v2502_v38  ;;  %v1353_v38 = vand.u32 4294901760, %v1352_v10  ;;  %v1358_v2 = vsub.f32 %v2625_v41, %v3293_v26  ;;  %v369_v63 = vadd.f32 %v3355_v61, %v304_v30  ;;  %v3287_v10 = vand.u32 4294901760, %v2681_v50 }
 0x134   :  { %v1371_v56 = vand.u32 4294901760, %v1370_v33  ;;  %v1377_v58 = vand.u32 4294901760, %v1376_v16  ;;  %v3294_v61 = vand.u32 4294901760, %v2538_v52 }
 0x135   :  { %v1359_v0 = vand.u32 4294901760, %v1358_v2  ;;  %v1382_v29 = vsub.f32 %v2681_v50, %v3287_v10 }
 0x136   :  { %v1022_v33 = vsub.f32 %v2538_v52, %v3294_v61  ;;  %v472_v61 = vld [vmem:[#allocation2 + $0x48] sm:$0xff] }
 0x138   :  { %v1023_v26 = vand.u32 4294901760, %v1022_v33 }
 0x167   :  { %v2606_v31 = vpop.permute.xlu0 %446 }
 0x168   :  { %v459_v19 = vsel %vm458_vm1, %v412_v12, %v2606_v31  ;;  %v2683_v12 = vand.u32 4294901760, %v482_v39 }
 0x169   :  { %v2628_v34 = vand.u32 4294901760, %v459_v19 }
 0x16a   :  { %v2702_v30 = vsub.f32 %v482_v39, %v2683_v12  ;;  %v476_v39 = vld [vmem:[#allocation2 + $0x68] sm:$0xff] }
 0x16b   :  { %3351 = vst [vmem:[#allocation8_spill] sm:$0xff] %v2628_v34  ;;  %v2644_v35 = vsub.f32 %v459_v19, %v2628_v34  ;;  %682 = vmatmul.f32.vlgmr.msrb.gmra.mxu3 %v2628_v34  ;;  %889 = vmatmul.f32.vlgmr.msra.gmra.mxu0 %v2628_v34  ;;  %v3356_v19 = vld [vmem:[#allocation13_spill] sm:$0xff]  ;;  %v2748_v27 = vand.u32 4294901760, %v476_v39 }
 0x16c   :  { %938 = vmatmul.f32.vlgmr.msra.gmra.mxu1 %v2628_v34  ;;  %1285 = vmatpush.msra.mxu0 %v2585_v20  ;;  %v310_v57 = vadd.f32 %v3356_v19, %v247_v51  ;;  %v3360_v51 = vld [vmem:[#allocation15_spill] sm:$0xff] }
 0x16d   :  { %v2662_v54 = vand.u32 4294901760, %v2644_v35  ;;  %1354 = vmatpush.msra.mxu1 %v1353_v38  ;;  %v2704_v38 = vand.u32 4294901760, %v480_v49  ;;  %v420_v2 = vadd.f32 %v3360_v51, %v369_v63  ;;  %v3289_v63 = vand.u32 4294901760, %v2702_v30  ;;  %v474_v51 = vld [vmem:[#allocation2 + $0x58] sm:$0xff]  ;;  %3364 = vst [vmem:[#allocation15_spill] sm:$0xff] %v2748_v27  ;;  %1024 = vmatpush.msrb.mxu3 %v1023_v26 }
 0x16e   :  { %1287 = vmatpush.msra.mxu0 %v2603_v14  ;;  %v373_v3 = vadd.f32 %v3366_v17, %v310_v57  ;;  %v3305_v26 = vand.u32 4294901760, %v2559_v15 }
 0x16f   :  { %v2675_v25 = vpop.permute.xlu0 %448  ;;  %v555_v13 = vsub.f32 %v2644_v35, %v2662_v54  ;;  %1360 = vmatpush.msra.mxu1 %v1359_v0  ;;  %3359 = vst [vmem:[#allocation10_spill] sm:$0xff] %v2704_v38  ;;  %v3292_v0 = vand.u32 4294901760, %v2548_v5  ;;  %v1388_v19 = vsub.f32 %v2702_v30, %v3289_v63  ;;  %v2750_v63 = vand.u32 4294901760, %v474_v51 }
 0x170   :  { %v460_v55 = vsel %vm458_vm1, %v416_v4, %v2675_v25  ;;  %1289 = vmatpush.msra.mxu0 %v2614_v11  ;;  %v2715_v4 = vand.u32 4294901760, %v478_v42 }
 0x171   :  { %v2692_v32 = vand.u32 4294901760, %v460_v55  ;;  %v2694_v22 = vand.u32 4294901760, %v555_v13  ;;  %1366 = vmatpush.msra.mxu1 %v1365_v18  ;;  %v1383_v18 = vand.u32 4294901760, %v1382_v29  ;;  %v1028_v16 = vsub.f32 %v2548_v5, %v3292_v0  ;;  %3365 = vst [vmem:[#allocation19_spill] sm:$0xff] %v2750_v63 }
 0x172   :  { %3361 = vst [vmem:[#allocation12_spill] sm:$0xff] %v2715_v4  ;;  %1291 = vmatpush.msra.mxu0 %v2640_v44  ;;  %v1389_v10 = vand.u32 4294901760, %v1388_v19  ;;  %v2772_v33 = vsub.f32 %v474_v51, %v2750_v63  ;;  %v2782_v19 = vand.u32 4294901760, %v472_v61 }
 0x173   :  { %3357 = vst [vmem:[#allocation11_spill] sm:$0xff] %v2692_v32  ;;  %v2708_v37 = vsub.f32 %v460_v55, %v2692_v32  ;;  %557 = vmatmul.f32.vlgmr.msrb.gmra.mxu2 %v2694_v22  ;;  %686 = vmatmul.f32.gmra.mxu3 %v2692_v32  ;;  %v2727_v55 = vsub.f32 %v480_v49, %v2704_v38 }
 0x174   :  { %3358 = vst [vmem:[#allocation9_spill] sm:$0xff] %v2694_v22  ;;  %893 = vmatmul.f32.gmra.mxu0 %v2692_v32  ;;  %942 = vmatmul.f32.gmra.mxu1 %v2692_v32  ;;  %v1029_v32 = vand.u32 4294901760, %v1028_v16 }
 0x175   :  { %v2723_v13 = vand.u32 4294901760, %v2708_v37  ;;  %1372 = vmatpush.msra.mxu1 %v1371_v56  ;;  %3362 = vst [vmem:[#allocation14_spill] sm:$0xff] %v2727_v55  ;;  %963 = vmatpush.msrb.mxu2 %v2533_v47  ;;  %v2740_v56 = vsub.f32 %v478_v42, %v2715_v4  ;;  %v512_v42 = vsel %vm511_vm2, %v2606_v31, 0  ;;  %v3369_v17 = vand.u32 4294901760, %v2727_v55 }
 0x176   :  { %1293 = vmatpush.msra.mxu0 %v2658_v46  ;;  %3371 = vst [vmem:[#allocation22_spill] sm:$0xff] %v2772_v33  ;;  %1030 = vmatpush.msrb.mxu3 %v1029_v32 }
 0x177   :  { %3363 = vst [vmem:[#allocation13_spill] sm:$0xff] %v2740_v56  ;;  %v2742_v49 = vpop.permute.xlu1 %450  ;;  %v563_v29 = vsub.f32 %v2708_v37, %v2723_v13  ;;  %1378 = vmatpush.msra.mxu1 %v1377_v58  ;;  %965 = vmatpush.msrb.mxu2 %v2541_v28  ;;  %v1394_v31 = vsub.f32 %v2727_v55, %v3369_v17  ;;  %v3303_v57 = vand.u32 4294901760, %v2740_v56  ;;  %v3373_v17 = vld [vmem:[#allocation17_spill] sm:$0xff] }
 0x178   :  { %v461_v0 = vsel %vm458_vm1, %v420_v2, %v2742_v49  ;;  %1295 = vmatpush.msra.mxu0 %v2668_v60  ;;  %v2769_v2 = vsub.f32 %v476_v39, %v2748_v27 }
 0x179   :  { %v2758_v21 = vand.u32 4294901760, %v461_v0  ;;  %v2760_v58 = vand.u32 4294901760, %v563_v29  ;;  %1384 = vmatpush.msra.mxu1 %v1383_v18  ;;  %967 = vmatpush.msrb.mxu2 %v2550_v53  ;;  %v2774_v29 = vand.u32 4294901760, %v512_v42  ;;  %v1395_v39 = vand.u32 4294901760, %v1394_v31 }
 0x17a   :  { %3370 = vst [vmem:[#allocation21_spill] sm:$0xff] %v2769_v2  ;;  %v1400_v16 = vsub.f32 %v2740_v56, %v3303_v57  ;;  %1297 = vmatpush.msra.mxu0 %v2683_v12  ;;  %v1034_v31 = vsub.f32 %v2559_v15, %v3305_v26 }
 0x17b   :  { %3367 = vst [vmem:[#allocation16_spill] sm:$0xff] %v2758_v21  ;;  %v2777_v18 = vsub.f32 %v461_v0, %v2758_v21  ;;  %565 = vmatmul.f32.gmra.mxu2 %v2760_v58  ;;  %690 = vmatmul.f32.gmra.mxu3 %v2758_v21  ;;  %v3306_v0 = vand.u32 4294901760, %v2769_v2 }
 0x17c   :  { %3368 = vst [vmem:[#allocation20_spill] sm:$0xff] %v2760_v58  ;;  %897 = vmatmul.f32.gmra.mxu0 %v2758_v21  ;;  %946 = vmatmul.f32.gmra.mxu1 %v2758_v21  ;;  %v424_v58 = vadd.f32 %v3373_v17, %v373_v3  ;;  %v3313_v21 = vand.u32 4294901760, %v2568_v6  ;;  %v1401_v57 = vand.u32 4294901760, %v1400_v16  ;;  %v3374_v3 = vand.u32 4294901760, %v2772_v33 }
 0x17d   :  { %3372 = vst [vmem:[#allocation23_spill] sm:$0xff] %v2774_v29  ;;  %v2793_v34 = vand.u32 4294901760, %v2777_v18  ;;  %1390 = vmatpush.msra.mxu1 %v1389_v10  ;;  %v1406_v51 = vsub.f32 %v2769_v2, %v3306_v0  ;;  %969 = vmatpush.msrb.mxu2 %v2561_v59  ;;  %v2808_v10 = vsub.f32 %v472_v61, %v2782_v19  ;;  %v1035_v32 = vand.u32 4294901760, %v1034_v31  ;;  %v470_v2 = vld [vmem:[#allocation2 + $0x38] sm:$0xff] }
 0x17e   :  { %v1412_v17 = vsub.f32 %v2772_v33, %v3374_v3  ;;  %1299 = vmatpush.msra.mxu0 %v2704_v38  ;;  %v1040_v16 = vsub.f32 %v2568_v6, %v3313_v21  ;;  %v2820_v3 = vsub.f32 %v512_v42, %v2774_v29  ;;  %v468_v33 = vld [vmem:[#allocation2 + $0x28] sm:$0xff]  ;;  %v3378_v42 = vand.u32 4294901760, %v2581_v48 }
 0x17f   :  { %3375 = vst [vmem:[#allocation17_spill] sm:$0xff] %v2808_v10  ;;  %v2810_v22 = vpop.permute.xlu1 %452  ;;  %v571_v26 = vsub.f32 %v2777_v18, %v2793_v34  ;;  %1396 = vmatpush.msra.mxu1 %v1395_v39  ;;  %971 = vmatpush.msrb.mxu2 %v2570_v7  ;;  %v1407_v31 = vand.u32 4294901760, %v1406_v51  ;;  %v3323_v0 = vand.u32 4294901760, %v2808_v10  ;;  %v2843_v51 = vand.u32 4294901760, %v468_v33 }
 0x180   :  { %v462_v61 = vsel %vm458_vm1, %v424_v58, %v2810_v22  ;;  %1301 = vmatpush.msra.mxu0 %v2715_v4  ;;  %v1041_v21 = vand.u32 4294901760, %v1040_v16  ;;  %1036 = vmatpush.msrb.mxu3 %v1035_v32  ;;  %v1046_v29 = vsub.f32 %v2581_v48, %v3378_v42  ;;  %v2834_v58 = vand.u32 4294901760, %v470_v2  ;;  %v466_v16 = vld [vmem:[#allocation2 + $0x18] sm:$0xff] }
 0x181   :  { %v2825_v56 = vand.u32 4294901760, %v462_v61  ;;  %v2827_v39 = vand.u32 4294901760, %v571_v26  ;;  %1402 = vmatpush.msra.mxu1 %v1401_v57  ;;  %973 = vmatpush.msrb.mxu2 %v2583_v40  ;;  %v1413_v57 = vand.u32 4294901760, %v1412_v17  ;;  %v1418_v42 = vsub.f32 %v2808_v10, %v3323_v0  ;;  %v464_v0 = vld [vmem:[#allocation2 + $0x8] sm:$0xff] }
 0x182   :  { %v2852_v38 = vsub.f32 %v470_v2, %v2834_v58  ;;  %v514_v32 = vsel %vm511_vm2, %v2675_v25, 0  ;;  %1303 = vmatpush.msra.mxu0 %v2748_v27  ;;  %1042 = vmatpush.msrb.mxu3 %v1041_v21  ;;  %v2870_v25 = vand.u32 4294901760, %v466_v16  ;;  %v2879_v21 = vand.u32 4294901760, %v2820_v3 }
 0x183   :  { %3376 = vst [vmem:[#allocation24_spill] sm:$0xff] %v2825_v56  ;;  %v2839_v26 = vsub.f32 %v462_v61, %v2825_v56  ;;  %573 = vmatmul.f32.gmra.mxu2 %v2827_v39  ;;  %694 = vmatmul.f32.gmra.mxu3 %v2825_v56  ;;  %v1047_v61 = vand.u32 4294901760, %v1046_v29  ;;  %v3382_v29 = vand.u32 4294901760, %v2611_v36  ;;  %v1419_v10 = vand.u32 4294901760, %v1418_v42 }
 0x184   :  { %3377 = vst [vmem:[#allocation25_spill] sm:$0xff] %v2827_v39  ;;  %901 = vmatmul.f32.gmra.mxu0 %v2825_v56  ;;  %950 = vmatmul.f32.gmra.mxu1 %v2825_v56  ;;  %v3381_v39 = vand.u32 4294901760, %v2591_v8  ;;  %v2864_v56 = vsub.f32 %v468_v33, %v2843_v51  ;;  %v2887_v27 = vand.u32 4294901760, %v464_v0 }
 0x185   :  { %3379 = vst [vmem:[#allocation26_spill] sm:$0xff] %v2839_v26  ;;  %v2860_v4 = vand.u32 4294901760, %v2839_v26  ;;  %1408 = vmatpush.msra.mxu1 %v1407_v31  ;;  %v1058_v2 = vsub.f32 %v2611_v36, %v3382_v29  ;;  %975 = vmatpush.msrb.mxu2 %v2593_v9 }
 0x186   :  { %3380 = vst [vmem:[#allocation27_spill] sm:$0xff] %v2852_v38  ;;  %v1052_v17 = vsub.f32 %v2591_v8, %v3381_v39  ;;  %v3330_v39 = vand.u32 4294901760, %v2852_v38  ;;  %1305 = vmatpush.msra.mxu0 %v2750_v63  ;;  %1048 = vmatpush.msrb.mxu3 %v1047_v61  ;;  %v3383_v61 = vand.u32 4294901760, %v2864_v56  ;;  %v2903_v36 = vsub.f32 %v464_v0, %v2887_v27 }
 0x187   :  { %v579_v31 = vsub.f32 %v2839_v26, %v2860_v4  ;;  %1414 = vmatpush.msra.mxu1 %v1413_v57  ;;  %977 = vmatpush.msrb.mxu2 %v2595_v62  ;;  %v2890_v57 = vand.u32 4294901760, %v514_v32  ;;  %v1059_v63 = vand.u32 4294901760, %v1058_v2 }
 0x188   :  { %v1053_v55 = vand.u32 4294901760, %v1052_v17  ;;  %v1424_v42 = vsub.f32 %v2852_v38, %v3330_v39  ;;  %v2885_v17 = vsub.f32 %v466_v16, %v2870_v25  ;;  %1307 = vmatpush.msra.mxu0 %v2782_v19  ;;  %v1430_v29 = vsub.f32 %v2864_v56, %v3383_v61 }
 0x189   :  { %v2892_v33 = vand.u32 4294901760, %v579_v31  ;;  %1420 = vmatpush.msra.mxu1 %v1419_v10  ;;  %v3384_v39 = vand.u32 4294901760, %v2622_v24  ;;  %v1441_v2 = vand.u32 4294901760, %v2903_v36  ;;  %v2915_v0 = vsub.f32 %v514_v32, %v2890_v57 }
 0x18a   :  { %v1425_v38 = vand.u32 4294901760, %v1424_v42  ;;  %1054 = vmatpush.msrb.mxu3 %v1053_v55  ;;  %v1435_v26 = vand.u32 4294901760, %v2885_v17  ;;  %v1431_v10 = vand.u32 4294901760, %v1430_v29  ;;  %1309 = vmatpush.msra.mxu0 %v2834_v58  ;;  %v516_v42 = vsel %vm511_vm2, %v2742_v49, 0 }
 0x18b   :  { %v1064_v16 = vsub.f32 %v2622_v24, %v3384_v39  ;;  %581 = vmatmul.f32.gmra.mxu2 %v2892_v33  ;;  %802 = vmatmul.f32.vlgmr.msra.gmra.mxu3 %v2662_v54  ;;  %v1442_v29 = vsub.f32 %v2903_v36, %v1441_v2  ;;  %v2924_v61 = vand.u32 4294901760, %v516_v42  ;;  %v3385_v32 = vand.u32 4294901760, %v2598_v43 }
 0x18c   :  { %1118 = vmatmul.f32.vlgmr.msrb.gmra.mxu0 %v2820_v3  ;;  %1164 = vmatmul.f32.vlgmr.msrb.gmra.mxu1 %v2879_v21  ;;  %v1436_v39 = vsub.f32 %v2885_v17, %v1435_v26 }
 0x18d   :  { %v1065_v55 = vand.u32 4294901760, %v1064_v16  ;;  %1426 = vmatpush.msra.mxu1 %v1425_v38  ;;  %1060 = vmatpush.msrb.mxu3 %v1059_v63  ;;  %v1443_v38 = vand.u32 4294901760, %v1442_v29  ;;  %v2927_v63 = vand.u32 4294901760, %v2915_v0  ;;  %v2936_v49 = vsub.f32 %v516_v42, %v2924_v61 }
 0x18e   :  { %v1437_v31 = vand.u32 4294901760, %v1436_v39  ;;  %1311 = vmatpush.msra.mxu0 %v2843_v51  ;;  %v3386_v16 = vand.u32 4294901760, %v2538_v52  ;;  %v3388_v39 = vand.u32 4294901760, %v2548_v5  ;;  %v3389_v52 = vand.u32 4294901760, %v2636_v23 }
 0x18f   :  { %1432 = vmatpush.msra.mxu1 %v1431_v10  ;;  %1066 = vmatpush.msrb.mxu3 %v1065_v55  ;;  %v3387_v10 = vand.u32 4294901760, %v2625_v41  ;;  %v3393_v29 = vand.u32 4294901760, %v2568_v6  ;;  %v3394_v42 = vand.u32 4294901760, %v2681_v50  ;;  %v3396_v6 = vand.u32 4294901760, %v2702_v30 }
 0x190   :  { %1313 = vmatpush.msra.mxu0 %v2870_v25 }
 0x191   :  { %1438 = vmatpush.msra.mxu1 %v1437_v31  ;;  %1252 = vmatpush.msra.mxu3 %v2533_v47  ;;  %v518_v47 = vsel %vm511_vm2, %v2810_v22, 0  ;;  %v2955_v31 = vand.u32 4294901760, %v2936_v49  ;;  %v3392_v22 = vand.u32 4294901760, %v2673_v1 }
 0x192   :  { %1315 = vmatpush.msra.mxu0 %v2887_v27  ;;  %v2952_v55 = vand.u32 4294901760, %v518_v47 }
 0x193   :  { %748 = vmatmul.f32.vlgmr.msra.gmra.mxu2 %v2644_v35  ;;  %808 = vmatmul.f32.gmra.mxu3 %v2723_v13 }
 0x194   :  { %1123 = vmatmul.f32.gmra.mxu0 %v2915_v0  ;;  %1170 = vmatmul.f32.gmra.mxu1 %v2927_v63  ;;  %v2968_v5 = vsub.f32 %v518_v47, %v2952_v55 }
 0x195   :  { %1444 = vmatpush.msra.mxu1 %v1443_v38  ;;  %1591 = vmatpush.msrb.mxu0 %v3385_v32  ;;  %v3400_v38 = vld [vmem:[#allocation10_spill] sm:$0xff] }
 0x196   :  { %1197 = vmatpush.msra.mxu2 %v3386_v16  ;;  %1254 = vmatpush.msra.mxu3 %v2541_v28  ;;  %v3390_v28 = vand.u32 4294901760, %v2656_v45  ;;  %v3401_v32 = vld [vmem:[#allocation18_spill] sm:$0xff]  ;;  %v3403_v16 = vld [vmem:[#allocation13_spill] sm:$0xff] }
 0x197   :  { %1670 = vmatpush.msrb.mxu1 %v2585_v20  ;;  %1595 = vmatpush.msrb.mxu0 %v3387_v10  ;;  %v3402_v47 = vand.u32 4294901760, %v3401_v32  ;;  %v3404_v10 = vand.u32 4294901760, %v3403_v16 }
 0x198   :  { %1201 = vmatpush.msra.mxu2 %v3388_v39  ;;  %1256 = vmatpush.msra.mxu3 %v2550_v53  ;;  %v3391_v53 = vand.u32 4294901760, %v2559_v15  ;;  %v2983_v15 = vand.u32 4294901760, %v2968_v5  ;;  %v3405_v39 = vld [vmem:[#allocation12_spill] sm:$0xff] }
 0x199   :  { %1672 = vmatpush.msrb.mxu1 %v2603_v14  ;;  %1599 = vmatpush.msrb.mxu0 %v3389_v52  ;;  %v3407_v52 = vld [vmem:[#allocation26_spill] sm:$0xff] }
 0x19a   :  { %1205 = vmatpush.msra.mxu2 %v3391_v53  ;;  %1258 = vmatpush.msra.mxu3 %v2561_v59  ;;  %v3395_v59 = vand.u32 4294901760, %v2581_v48  ;;  %v3398_v48 = vld [vmem:[#allocation14_spill] sm:$0xff]  ;;  %v3410_v53 = vld [vmem:[#allocation8_spill] sm:$0xff] }
 0x19b   :  { %1674 = vmatpush.msrb.mxu1 %v2614_v11  ;;  %753 = vmatmul.f32.gmra.mxu2 %v2708_v37 }
 0x19c   :  { %814 = vmatmul.f32.gmra.mxu3 %v2793_v34  ;;  %1128 = vmatmul.f32.gmra.mxu0 %v2936_v49 }
 0x19d   :  { %1176 = vmatmul.f32.gmra.mxu1 %v2955_v31  ;;  %1603 = vmatpush.msrb.mxu0 %v3390_v28  ;;  %v3409_v28 = vld [vmem:[#allocation9_spill] sm:$0xff] }
 0x19e   :  { %1676 = vmatpush.msrb.mxu1 %v2640_v44  ;;  %1209 = vmatpush.msra.mxu2 %v3393_v29 }
 0x19f   :  { %1607 = vmatpush.msrb.mxu0 %v3392_v22  ;;  %1260 = vmatpush.msra.mxu3 %v2570_v7  ;;  %v3397_v7 = vand.u32 4294901760, %v2591_v8  ;;  %v3406_v8 = vand.u32 4294901760, %v2622_v24  ;;  %v3411_v22 = vld [vmem:[#allocation21_spill] sm:$0xff]  ;;  %v3414_v24 = vld [vmem:[#allocation22_spill] sm:$0xff] }
 0x1a0   :  { %1678 = vmatpush.msrb.mxu1 %v2658_v46  ;;  %1213 = vmatpush.msra.mxu2 %v3395_v59  ;;  %v3412_v29 = vand.u32 4294901760, %v3411_v22  ;;  %v3415_v59 = vand.u32 4294901760, %v3414_v24 }
 0x1a1   :  { %1611 = vmatpush.msrb.mxu0 %v3394_v42  ;;  %1262 = vmatpush.msra.mxu3 %v2583_v40  ;;  %v3399_v40 = vand.u32 4294901760, %v3398_v48  ;;  %v3413_v42 = vld [vmem:[#allocation15_spill] sm:$0xff] }
 0x1a2   :  { %1680 = vmatpush.msrb.mxu1 %v2668_v60  ;;  %1217 = vmatpush.msra.mxu2 %v3397_v7 }
 0x1a3   :  { %758 = vmatmul.f32.gmra.mxu2 %v2777_v18  ;;  %1615 = vmatpush.msrb.mxu0 %v3396_v6  ;;  %v3416_v6 = vld [vmem:[#allocation19_spill] sm:$0xff] }
 0x1a4   :  { %820 = vmatmul.f32.gmra.mxu3 %v2860_v4  ;;  %1133 = vmatmul.f32.gmra.mxu0 %v2968_v5 }
 0x1a5   :  { %1182 = vmatmul.f32.gmra.mxu1 %v2983_v15  ;;  %1264 = vmatpush.msra.mxu3 %v2593_v9  ;;  %v3408_v9 = vld [vmem:[#allocation23_spill] sm:$0xff] }
 0x1a6   :  { %1682 = vmatpush.msrb.mxu1 %v2683_v12  ;;  %1619 = vmatpush.msrb.mxu0 %v3399_v40  ;;  %v3417_v40 = vld [vmem:[#allocation17_spill] sm:$0xff] }
 0x1a7   :  { %1266 = vmatpush.msra.mxu3 %v2595_v62  ;;  %1221 = vmatpush.msra.mxu2 %v3402_v47  ;;  %v981_v62 = vsub.f32 %v2820_v3, %v2879_v21  ;;  %v3418_v32 = vand.u32 4294901760, %v3417_v40  ;;  %v3420_v47 = vld [vmem:[#allocation11_spill] sm:$0xff] }
 0x1a8   :  { %1684 = vmatpush.msrb.mxu1 %v3400_v38  ;;  %1623 = vmatpush.msrb.mxu0 %v3404_v10  ;;  %v3421_v10 = vld [vmem:[#allocation27_spill] sm:$0xff] }
 0x1a9   :  { %1225 = vmatpush.msra.mxu2 %v3406_v8  ;;  %v3023_v7 = vand.u32 4294901760, %v981_v62  ;;  %v3422_v8 = vand.u32 4294901760, %v3421_v10  ;;  %v506_v62 = vld [vmem:[#allocation2 + $0x158] sm:$0xff] }
 0x1aa   :  { %1686 = vmatpush.msrb.mxu1 %v3405_v39  ;;  %1627 = vmatpush.msrb.mxu0 %v3412_v29  ;;  %v504_v29 = vld [vmem:[#allocation2 + $0x148] sm:$0xff] }
 0x1ab   :  { %763 = vmatmul.f32.gmra.mxu2 %v3407_v52 }
 0x1ac   :  { %1068 = vmatmul.f32.vlgmr.msrb.gmra.mxu3 %v3408_v9  ;;  %1321 = vmatmul.f32.vlgmr.msra.gmra.mxu0 %v3409_v28 }
 0x1ad   :  { %1446 = vmatmul.f32.vlgmr.msra.gmra.mxu1 %v3410_v53  ;;  %1532 = vmatpush.msrb.mxu3 %v2585_v20  ;;  %v3419_v20 = vld [vmem:[#allocation20_spill] sm:$0xff] }
 0x1ae   :  { %1688 = vmatpush.msrb.mxu1 %v3413_v42  ;;  %1631 = vmatpush.msrb.mxu0 %v3415_v59 }
 0x1af   :  { %1534 = vmatpush.msrb.mxu3 %v2603_v14  ;;  %v989_v14 = vsub.f32 %v2915_v0, %v2927_v63 }
 0x1b0   :  { %1690 = vmatpush.msrb.mxu1 %v3416_v6  ;;  %1635 = vmatpush.msrb.mxu0 %v3418_v32  ;;  %v3071_v32 = vand.u32 4294901760, %v506_v62 }
 0x1b1   :  { %1536 = vmatpush.msrb.mxu3 %v2614_v11  ;;  %v3423_v11 = vand.u32 4294901760, %v2864_v56  ;;  %v3045_v28 = vand.u32 4294901760, %v989_v14  ;;  %v500_v14 = vld [vmem:[#allocation2 + $0x128] sm:$0xff] }
 0x1b2   :  { %1692 = vmatpush.msrb.mxu1 %v2782_v19  ;;  %1639 = vmatpush.msrb.mxu0 %v3422_v8  ;;  %v1005_v8 = vsub.f32 %v2968_v5, %v2983_v15 }
 0x1b3   :  { %983 = vmatmul.f32.vlgmr.msrb.gmra.mxu2 %v3023_v7  ;;  %1538 = vmatpush.msrb.mxu3 %v2640_v44  ;;  %v3425_v44 = vld [vmem:[#allocation16_spill] sm:$0xff] }
 0x1b4   :  { %1072 = vmatmul.f32.gmra.mxu3 %v2890_v57  ;;  %1329 = vmatmul.f32.gmra.mxu0 %v3419_v20  ;;  %v502_v20 = vld [vmem:[#allocation2 + $0x138] sm:$0xff] }
 0x1b5   :  { %1450 = vmatmul.f32.gmra.mxu1 %v3420_v47  ;;  %1464 = vmatpush.msrb.mxu2 %v2598_v43  ;;  %v3424_v43 = vld [vmem:[#allocation25_spill] sm:$0xff] }
 0x1b6   :  { %1694 = vmatpush.msrb.mxu1 %v2834_v58  ;;  %1643 = vmatpush.msrb.mxu0 %v3423_v11  ;;  %v498_v11 = vld [vmem:[#allocation2 + $0x118] sm:$0xff] }
 0x1b7   :  { %1540 = vmatpush.msrb.mxu3 %v2658_v46  ;;  %1467 = vmatpush.msrb.mxu2 %v2625_v41  ;;  %v510_v41 = vld [vmem:[#allocation2 + $0x178] sm:$0xff]  ;;  %v508_v46 = vld [vmem:[#allocation2 + $0x168] sm:$0xff] }
 0x1b8   :  { %1696 = vmatpush.msrb.mxu1 %v2843_v51  ;;  %1647 = vmatpush.msrb.mxu0 %v1435_v26  ;;  %v997_v26 = vsub.f32 %v2936_v49, %v2955_v31 }
 0x1b9   :  { %1542 = vmatpush.msrb.mxu3 %v2668_v60  ;;  %1470 = vmatpush.msrb.mxu2 %v2636_v23  ;;  %v3061_v23 = vand.u32 4294901760, %v510_v41  ;;  %v3063_v60 = vand.u32 4294901760, %v508_v46 }
 0x1ba   :  { %1698 = vmatpush.msrb.mxu1 %v2870_v25  ;;  %1651 = vmatpush.msrb.mxu0 %v1441_v2  ;;  %v3075_v2 = vand.u32 4294901760, %v997_v26 }
 0x1bb   :  { %991 = vmatmul.f32.gmra.mxu2 %v3045_v28  ;;  %1544 = vmatpush.msrb.mxu3 %v2683_v12  ;;  %v3068_v59 = vsub.f32 %v510_v41, %v3061_v23  ;;  %v3079_v12 = vsub.f32 %v508_v46, %v3063_v60 }
 0x1bc   :  { %1076 = vmatmul.f32.gmra.mxu3 %v2924_v61  ;;  %1337 = vmatmul.f32.gmra.mxu0 %v3424_v43  ;;  %v496_v43 = vld [vmem:[#allocation2 + $0x108] sm:$0xff] }
 0x1bd   :  { %1454 = vmatmul.f32.gmra.mxu1 %v3425_v44  ;;  %1473 = vmatpush.msrb.mxu2 %v2656_v45  ;;  %v3082_v45 = vand.u32 4294901760, %v504_v29 }
 0x1be   :  { %1700 = vmatpush.msrb.mxu1 %v2887_v27  ;;  %1546 = vmatpush.msrb.mxu3 %v3400_v38  ;;  %v3426_v38 = vld [vmem:[#allocation24_spill] sm:$0xff] }
 0x1bf   :  { %1476 = vmatpush.msrb.mxu2 %v2673_v1  ;;  %1858 = vmatpush.msra.mxu0 %v3068_v59  ;;  %v3089_v1 = vsub.f32 %v506_v62, %v3071_v32 }
 0x1c0   :  { %1910 = vmatpush.msra.mxu1 %v3061_v23  ;;  %1548 = vmatpush.msrb.mxu3 %v3405_v39  ;;  %v3100_v39 = vand.u32 4294901760, %v502_v20 }
 0x1c1   :  { %1479 = vmatpush.msrb.mxu2 %v2681_v50  ;;  %1861 = vmatpush.msra.mxu0 %v3079_v12  ;;  %v3098_v50 = vsub.f32 %v504_v29, %v3082_v45 }
 0x1c2   :  { %1912 = vmatpush.msra.mxu1 %v3063_v60  ;;  %1550 = vmatpush.msrb.mxu3 %v3413_v42  ;;  %v3110_v42 = vand.u32 4294901760, %v1005_v8 }
 0x1c3   :  { %999 = vmatmul.f32.gmra.mxu2 %v3075_v2  ;;  %1864 = vmatpush.msra.mxu0 %v3089_v1 }
 0x1c4   :  { %1080 = vmatmul.f32.gmra.mxu3 %v2952_v55  ;;  %1345 = vmatmul.f32.gmra.mxu0 %v2892_v33  ;;  %v3106_v33 = vand.u32 4294901760, %v500_v14 }
 0x1c5   :  { %1458 = vmatmul.f32.gmra.mxu1 %v3426_v38  ;;  %1482 = vmatpush.msrb.mxu2 %v2702_v30  ;;  %v3115_v30 = vsub.f32 %v502_v20, %v3100_v39 }
 0x1c6   :  { %1914 = vmatpush.msra.mxu1 %v3071_v32  ;;  %1552 = vmatpush.msrb.mxu3 %v3416_v6  ;;  %v3119_v6 = vand.u32 4294901760, %v498_v11 }
 0x1c7   :  { %1485 = vmatpush.msrb.mxu2 %v3398_v48  ;;  %1867 = vmatpush.msra.mxu0 %v3098_v50  ;;  %v3124_v48 = vsub.f32 %v500_v14, %v3106_v33 }
 0x1c8   :  { %1916 = vmatpush.msra.mxu1 %v3082_v45  ;;  %1554 = vmatpush.msrb.mxu3 %v2782_v19  ;;  %v3131_v19 = vsub.f32 %v498_v11, %v3119_v6 }
 0x1c9   :  { %1488 = vmatpush.msrb.mxu2 %v3403_v16  ;;  %1870 = vmatpush.msra.mxu0 %v3115_v30  ;;  %v3133_v16 = vand.u32 4294901760, %v496_v43  ;;  %v1815_v46 = vand.u32 4294901760, %v3124_v48 }
 0x1ca   :  { %1918 = vmatpush.msra.mxu1 %v3100_v39  ;;  %1556 = vmatpush.msrb.mxu3 %v2834_v58  ;;  %v1821_v29 = vand.u32 4294901760, %v3131_v19 }
 0x1cb   :  { %1007 = vmatmul.f32.gmra.mxu2 %v3110_v42  ;;  %1873 = vmatpush.msra.mxu0 %v3124_v48  ;;  %v3144_v58 = vsub.f32 %v496_v43, %v3133_v16  ;;  %v1816_v26 = vsub.f32 %v3124_v48, %v1815_v46 }
 0x1cc   :  { %1268 = vmatmul.f32.vlgmr.msra.gmra.mxu3 %v3408_v9  ;;  %1653 = vmatmul.f32.vlgmr.msrb.gmra.mxu0 %v3410_v53 }
 0x1cd   :  { %1702 = vmatmul.f32.vlgmr.msrb.gmra.mxu1 %v3410_v53  ;;  %1491 = vmatpush.msrb.mxu2 %v3411_v22  ;;  %v1791_v22 = vand.u32 4294901760, %v3079_v12 }
 0x1ce   :  { %1920 = vmatpush.msra.mxu1 %v3106_v33  ;;  %1558 = vmatpush.msrb.mxu3 %v2843_v51  ;;  %v1785_v51 = vand.u32 4294901760, %v3068_v59 }
 0x1cf   :  { %1494 = vmatpush.msrb.mxu2 %v3414_v24  ;;  %1876 = vmatpush.msra.mxu0 %v3131_v19  ;;  %v1797_v24 = vand.u32 4294901760, %v3089_v1 }
 0x1d0   :  { %1922 = vmatpush.msra.mxu1 %v3119_v6  ;;  %1560 = vmatpush.msrb.mxu3 %v2870_v25  ;;  %v1786_v25 = vsub.f32 %v3068_v59, %v1785_v51 }
 0x1d1   :  { %1497 = vmatpush.msrb.mxu2 %v3417_v40  ;;  %1879 = vmatpush.msra.mxu0 %v3144_v58 }
 0x1d2   :  { %1924 = vmatpush.msra.mxu1 %v3133_v16  ;;  %1562 = vmatpush.msrb.mxu3 %v2887_v27  ;;  %v1787_v53 = vand.u32 4294901760, %v1786_v25  ;;  %v1792_v27 = vsub.f32 %v3079_v12, %v1791_v22  ;;  %v1827_v12 = vand.u32 4294901760, %v3144_v58 }
 0x1d3   :  { %1227 = vmatmul.f32.vlgmr.msra.gmra.mxu2 %v3408_v9 }
 0x1d4   :  { %1272 = vmatmul.f32.gmra.mxu3 %v2890_v57  ;;  %1657 = vmatmul.f32.gmra.mxu0 %v3420_v47  ;;  %v1828_v20 = vsub.f32 %v3144_v58, %v1827_v12 }
 0x1d5   :  { %1706 = vmatmul.f32.gmra.mxu1 %v3420_v47  ;;  %1500 = vmatpush.msrb.mxu2 %v3421_v10  ;;  %v1803_v47 = vand.u32 4294901760, %v3098_v50  ;;  %v1809_v10 = vand.u32 4294901760, %v3115_v30 }
 0x1d6   :  { %1788 = vmatpush.msra.mxu3 %v1787_v53  ;;  %v1829_v8 = vand.u32 4294901760, %v1828_v20 }
 0x1d7   :  { %1503 = vmatpush.msrb.mxu2 %v2864_v56  ;;  %v1793_v56 = vand.u32 4294901760, %v1792_v27  ;;  %v1810_v41 = vsub.f32 %v3115_v30, %v1809_v10 }
 0x1d9   :  { %1506 = vmatpush.msrb.mxu2 %v2885_v17  ;;  %v1798_v17 = vsub.f32 %v3089_v1, %v1797_v24  ;;  %1794 = vmatpush.msra.mxu3 %v1793_v56  ;;  %v1811_v62 = vand.u32 4294901760, %v1810_v41  ;;  %v1817_v1 = vand.u32 4294901760, %v1816_v26 }
 0x1db   :  { %1231 = vmatmul.f32.gmra.mxu2 %v2890_v57  ;;  %v1799_v40 = vand.u32 4294901760, %v1798_v17 }
 0x1dc   :  { %1276 = vmatmul.f32.gmra.mxu3 %v2924_v61  ;;  %1661 = vmatmul.f32.gmra.mxu0 %v3425_v44 }
 0x1dd   :  { %1710 = vmatmul.f32.gmra.mxu1 %v3425_v44  ;;  %1509 = vmatpush.msrb.mxu2 %v2903_v36  ;;  %v1804_v36 = vsub.f32 %v3098_v50, %v1803_v47 }
 0x1de   :  { %1800 = vmatpush.msra.mxu3 %v1799_v40 }
 0x1df   :  { %1727 = vmatpush.msra.mxu2 %v3061_v23  ;;  %v1805_v44 = vand.u32 4294901760, %v1804_v36 }
 0x1e1   :  { %1729 = vmatpush.msra.mxu2 %v3063_v60  ;;  %1806 = vmatpush.msra.mxu3 %v1805_v44 }
 0x1e3   :  { %1731 = vmatpush.msra.mxu2 %v3071_v32  ;;  %1812 = vmatpush.msra.mxu3 %v1811_v62 }
 0x1e4   :  { %1235 = vmatmul.f32.gmra.mxu2 %v2924_v61  ;;  %1280 = vmatmul.f32.gmra.mxu3 %v2952_v55 }
 0x1e5   :  { %1665 = vmatmul.f32.gmra.mxu0 %v3426_v38  ;;  %1714 = vmatmul.f32.gmra.mxu1 %v3426_v38  ;;  %v1822_v38 = vsub.f32 %v3131_v19, %v1821_v29 }
 0x1e6   :  { %1733 = vmatpush.msra.mxu2 %v3082_v45  ;;  %1818 = vmatpush.msra.mxu3 %v1817_v1 }
 0x1e7   :  { %v1823_v14 = vand.u32 4294901760, %v1822_v38 }
 0x1e8   :  { %1735 = vmatpush.msra.mxu2 %v3100_v39 }
 0x1e9   :  { %1824 = vmatpush.msra.mxu3 %v1823_v14 }
 0x1ea   :  { %1737 = vmatpush.msra.mxu2 %v3106_v33 }
 0x1eb   :  { %1830 = vmatpush.msra.mxu3 %v1829_v8 }
 0x1ec   :  { %1239 = vmatmul.f32.gmra.mxu2 %v2952_v55  ;;  %1566 = vmatmul.f32.vlgmr.msrb.gmra.mxu3 %v2662_v54 }
 0x1ed   :  { %1882 = vmatmul.f32.vlgmr.msra.gmra.mxu0 %v2820_v3  ;;  %1928 = vmatmul.f32.vlgmr.msra.gmra.mxu1 %v2879_v21 }
 0x1ee   :  { %1739 = vmatpush.msra.mxu2 %v3119_v6  ;;  %v683_v50 = vpop.f32.mrf.mxu3  ;;  %2016 = vmatpush.msrb.mxu3 %v3061_v23 }
 0x1f0   :  { %1741 = vmatpush.msra.mxu2 %v3133_v16  ;;  %2018 = vmatpush.msrb.mxu3 %v3063_v60 }
 0x1f2   :  { %2020 = vmatpush.msrb.mxu3 %v3071_v32 }
 0x1f4   :  { %1512 = vmatmul.f32.vlgmr.msrb.gmra.mxu2 %v2644_v35  ;;  %1572 = vmatmul.f32.gmra.mxu3 %v2723_v13 }
 0x1f5   :  { %1887 = vmatmul.f32.gmra.mxu0 %v2915_v0  ;;  %1934 = vmatmul.f32.gmra.mxu1 %v2927_v63 }
 0x1f6   :  { %1961 = vmatpush.msrb.mxu2 %v1785_v51  ;;  %v558_v54 = vpop.f32.mrf.mxu2  ;;  %v687_v3 = vpop.f32.mrf.mxu3  ;;  %2022 = vmatpush.msrb.mxu3 %v3082_v45 }
 0x1f7   :  { %v3204_v21 = vadd.f32 %v683_v50, %v558_v54 }
 0x1f8   :  { %1965 = vmatpush.msrb.mxu2 %v1791_v22  ;;  %2024 = vmatpush.msrb.mxu3 %v3100_v39 }
 0x1fa   :  { %1969 = vmatpush.msrb.mxu2 %v1797_v24  ;;  %2026 = vmatpush.msrb.mxu3 %v3106_v33 }
 0x1fc   :  { %1517 = vmatmul.f32.gmra.mxu2 %v2708_v37  ;;  %1578 = vmatmul.f32.gmra.mxu3 %v2793_v34 }
 0x1fd   :  { %1892 = vmatmul.f32.gmra.mxu0 %v2936_v49  ;;  %1940 = vmatmul.f32.gmra.mxu1 %v2955_v31  ;;  %v890_v49 = vpop.f32.mrf.mxu0  ;;  %v939_v31 = vpop.f32.mrf.mxu1 }
 0x1fe   :  { %1973 = vmatpush.msrb.mxu2 %v1803_v47  ;;  %v566_v35 = vpop.f32.mrf.mxu2  ;;  %v691_v13 = vpop.f32.mrf.mxu3  ;;  %2028 = vmatpush.msrb.mxu3 %v3119_v6 }
 0x1ff   :  { %v688_v0 = vadd.f32 %v687_v3, %v566_v35 }
 0x200   :  { %1977 = vmatpush.msrb.mxu2 %v1809_v10  ;;  %2030 = vmatpush.msrb.mxu3 %v3133_v16 }
 0x202   :  { %1981 = vmatpush.msrb.mxu2 %v1815_v46 }
 0x204   :  { %1522 = vmatmul.f32.gmra.mxu2 %v2777_v18  ;;  %1584 = vmatmul.f32.gmra.mxu3 %v2860_v4 }
 0x205   :  { %1897 = vmatmul.f32.gmra.mxu0 %v2968_v5  ;;  %1946 = vmatmul.f32.gmra.mxu1 %v2983_v15  ;;  %v894_v60 = vpop.f32.mrf.mxu0  ;;  %v943_v59 = vpop.f32.mrf.mxu1 }
 0x206   :  { %1985 = vmatpush.msrb.mxu2 %v1821_v29  ;;  %v574_v34 = vpop.f32.mrf.mxu2  ;;  %v695_v37 = vpop.f32.mrf.mxu3 }
 0x207   :  { %v692_v63 = vadd.f32 %v691_v13, %v574_v34 }
 0x208   :  { %1989 = vmatpush.msrb.mxu2 %v1827_v12 }
 0x20c   :  { %1527 = vmatmul.f32.gmra.mxu2 %v3407_v52  ;;  %1832 = vmatmul.f32.vlgmr.msra.gmra.mxu3 %v3408_v9 }
 0x20d   :  { %v898_v32 = vpop.f32.mrf.mxu0  ;;  %v947_v39 = vpop.f32.mrf.mxu1 }
 0x20e   :  { %v582_v18 = vpop.f32.mrf.mxu2  ;;  %v803_v23 = vpop.f32.mrf.mxu3 }
 0x20f   :  { %v696_v4 = vadd.f32 %v695_v37, %v582_v18 }
 0x214   :  { %1747 = vmatmul.f32.vlgmr.msra.gmra.mxu2 %v3023_v7  ;;  %1836 = vmatmul.f32.gmra.mxu3 %v2890_v57 }
 0x215   :  { %v902_v7 = vpop.f32.mrf.mxu0  ;;  %v3228_v11 = vpop.f32.mrf.mxu1 }
 0x216   :  { %v749_v5 = vpop.f32.mrf.mxu2  ;;  %v809_v15 = vpop.f32.mrf.mxu3 }
 0x217   :  { %v750_v58 = vadd.f32 %v749_v5, %v3204_v21 }
 0x219   :  { %v804_v53 = vadd.f32 %v803_v23, %v750_v58 }
 0x21b   :  { %v891_v27 = vadd.f32 %v890_v49, %v804_v53 }
 0x21c   :  { %1755 = vmatmul.f32.gmra.mxu2 %v3045_v28  ;;  %1840 = vmatmul.f32.gmra.mxu3 %v2924_v61 }
 0x21d   :  { %v1119_v43 = vpop.f32.mrf.mxu0  ;;  %v1165_v48 = vpop.f32.mrf.mxu1  ;;  %v940_v40 = vadd.f32 %v939_v31, %v891_v27 }
 0x21e   :  { %v754_v52 = vpop.f32.mrf.mxu2 }
 0x21f   :  { %v815_v45 = vpop.f32.mrf.mxu3  ;;  %v755_v22 = vadd.f32 %v754_v52, %v688_v0 }
 0x221   :  { %v810_v17 = vadd.f32 %v809_v15, %v755_v22 }
 0x223   :  { %v895_v10 = vadd.f32 %v894_v60, %v810_v17 }
 0x224   :  { %1763 = vmatmul.f32.gmra.mxu2 %v3075_v2  ;;  %1844 = vmatmul.f32.gmra.mxu3 %v2952_v55 }
 0x225   :  { %v1124_v16 = vpop.f32.mrf.mxu0  ;;  %v1171_v25 = vpop.f32.mrf.mxu1  ;;  %v944_v29 = vadd.f32 %v943_v59, %v895_v10 }
 0x226   :  { %v759_v33 = vpop.f32.mrf.mxu2 }
 0x227   :  { %v821_v30 = vpop.f32.mrf.mxu3 }
 0x22c   :  { %1771 = vmatmul.f32.gmra.mxu2 %v3110_v42  ;;  %2032 = vmatmul.f32.vlgmr.msrb.gmra.mxu3 %v3408_v9 }
 0x22d   :  { %v1177_v47 = vpop.f32.mrf.mxu1 }
 0x22e   :  { %v764_v28 = vpop.f32.mrf.mxu2 }
 0x22f   :  { %v1069_v6 = vpop.f32.mrf.mxu3  ;;  %v765_v38 = vadd.f32 %v764_v28, %v696_v4 }
 0x231   :  { %v822_v3 = vadd.f32 %v821_v30, %v765_v38 }
 0x233   :  { %v903_v37 = vadd.f32 %v902_v7, %v822_v3 }
 0x234   :  { %1991 = vmatmul.f32.vlgmr.msrb.gmra.mxu2 %v3408_v9  ;;  %2036 = vmatmul.f32.gmra.mxu3 %v2890_v57  ;;  %v1129_v9 = vpop.f32.mrf.mxu0 }
 0x235   :  { %v1183_v1 = vpop.f32.mrf.mxu1  ;;  %v952_v4 = vadd.f32 %v3228_v11, %v903_v37 }
 0x236   :  { %v984_v2 = vpop.f32.mrf.mxu2 }
 0x237   :  { %v1073_v19 = vpop.f32.mrf.mxu3  ;;  %v985_v36 = vadd.f32 %v984_v2, %v940_v40 }
 0x239   :  { %v1070_v44 = vadd.f32 %v1069_v6, %v985_v36 }
 0x23b   :  { %v1120_v12 = vadd.f32 %v1119_v43, %v1070_v44 }
 0x23c   :  { %1995 = vmatmul.f32.gmra.mxu2 %v2890_v57  ;;  %2040 = vmatmul.f32.gmra.mxu3 %v2924_v61  ;;  %v760_v57 = vadd.f32 %v759_v33, %v692_v63  ;;  %v1134_v62 = vpop.f32.mrf.mxu0 }
 0x23d   :  { %v1166_v8 = vadd.f32 %v1165_v48, %v1120_v12  ;;  %v1447_v63 = vpop.f32.mrf.mxu1 }
 0x23e   :  { %v992_v42 = vpop.f32.mrf.mxu2  ;;  %v816_v26 = vadd.f32 %v815_v45, %v760_v57 }
 0x23f   :  { %v1077_v51 = vpop.f32.mrf.mxu3 }
 0x240   :  { %v899_v20 = vadd.f32 %v898_v32, %v816_v26 }
 0x242   :  { %v948_v21 = vadd.f32 %v947_v39, %v899_v20 }
 0x244   :  { %1999 = vmatmul.f32.gmra.mxu2 %v2924_v61  ;;  %2044 = vmatmul.f32.gmra.mxu3 %v2952_v55  ;;  %v993_v61 = vadd.f32 %v992_v42, %v944_v29 }
 0x245   :  { %v1451_v30 = vpop.f32.mrf.mxu1 }
 0x246   :  { %v1000_v24 = vpop.f32.mrf.mxu2  ;;  %v1074_v14 = vadd.f32 %v1073_v19, %v993_v61 }
 0x247   :  { %v1081_v56 = vpop.f32.mrf.mxu3  ;;  %v1001_v13 = vadd.f32 %v1000_v24, %v948_v21 }
 0x248   :  { %v1125_v34 = vadd.f32 %v1124_v16, %v1074_v14 }
 0x249   :  { %v1078_v49 = vadd.f32 %v1077_v51, %v1001_v13 }
 0x24a   :  { %v1172_v31 = vadd.f32 %v1171_v25, %v1125_v34 }
 0x24b   :  { %v1130_v59 = vadd.f32 %v1129_v9, %v1078_v49 }
 0x24c   :  { %2003 = vmatmul.f32.gmra.mxu2 %v2952_v55  ;;  %v3240_v55 = vpop.f32.mrf.mxu0 }
 0x24d   :  { %v1178_v45 = vadd.f32 %v1177_v47, %v1130_v59  ;;  %v1455_v16 = vpop.f32.mrf.mxu1 }
 0x24e   :  { %v1008_v41 = vpop.f32.mrf.mxu2 }
 0x24f   :  { %v1269_v46 = vpop.f32.mrf.mxu3  ;;  %v1009_v5 = vadd.f32 %v1008_v41, %v952_v4 }
 0x251   :  { %v1082_v52 = vadd.f32 %v1081_v56, %v1009_v5 }
 0x253   :  { %v1135_v11 = vadd.f32 %v1134_v62, %v1082_v52 }
 0x254   :  { %v1330_v32 = vpop.f32.mrf.mxu0 }
 0x255   :  { %v1184_v43 = vadd.f32 %v1183_v1, %v1135_v11  ;;  %v1459_v53 = vpop.f32.mrf.mxu1  ;;  %v1452_v38 = vadd.f32 %v1451_v30, %v1330_v32 }
 0x256   :  { %v1228_v50 = vpop.f32.mrf.mxu2 }
 0x257   :  { %v1273_v54 = vpop.f32.mrf.mxu3  ;;  %v1229_v35 = vadd.f32 %v1228_v50, %v1166_v8 }
 0x259   :  { %v1270_v0 = vadd.f32 %v1269_v46, %v1229_v35  ;;  %v1448_v46 = vadd.f32 %v1447_v63, %v3240_v55 }
 0x25b   :  { %2049 = vst.msk [vmem:[#allocation5] sm:$0xff] %vm2048_vm3, %v1270_v0  ;;  %2091 = vrot.lane.b32.xlu0 %v1270_v0, %s2218_s10  ;;  %2057 = vrot.lane.b32.xlu2 %v1270_v0, %s2217_s0 }
 0x25c   :  { %v1338_v6 = vpop.f32.mrf.mxu0 }
 0x25d   :  { %v1703_v24 = vpop.f32.mrf.mxu1  ;;  %v1456_v35 = vadd.f32 %v1455_v16, %v1338_v6 }
 0x25e   :  { %v1232_v18 = vpop.f32.mrf.mxu2 }
 0x25f   :  { %v1277_v23 = vpop.f32.mrf.mxu3  ;;  %v1233_v60 = vadd.f32 %v1232_v18, %v1172_v31 }
 0x261   :  { %v1274_v15 = vadd.f32 %v1273_v54, %v1233_v60 }
 0x263   :  { %2050 = vst.msk [vmem:[#allocation5 + $0x8] sm:$0xff] %vm2048_vm3, %v1274_v15  ;;  %2093 = vrot.lane.b32.xlu1 %v1274_v15, %s2218_s10  ;;  %2076 = vrot.lane.b32.xlu0 %v1274_v15, %s2219_s11 }
 0x264   :  { %2074 = vrot.lane.b32.xlu2 %v1270_v0, %s2219_s11  ;;  %v1346_v25 = vpop.f32.mrf.mxu0 }
 0x265   :  { %v1707_v57 = vpop.f32.mrf.mxu1 }
 0x267   :  { %v1236_v39 = vpop.f32.mrf.mxu2  ;;  %v1281_v33 = vpop.f32.mrf.mxu3 }
 0x268   :  { %v1237_v7 = vadd.f32 %v1236_v39, %v1178_v45 }
 0x26a   :  { %v1278_v28 = vadd.f32 %v1277_v23, %v1237_v7  ;;  %v1460_v23 = vadd.f32 %v1459_v53, %v1346_v25 }
 0x26c   :  { %2051 = vst.msk [vmem:[#allocation5 + $0x10] sm:$0xff] %vm2048_vm3, %v1278_v28  ;;  %2078 = vrot.lane.b32.xlu1 %v1278_v28, %s2219_s11  ;;  %2061 = vrot.lane.b32.xlu0 %v1278_v28, %s2217_s0  ;;  %v1654_v9 = vpop.f32.mrf.mxu0 }
 0x26d   :  { %2059 = vrot.lane.b32.xlu2 %v1274_v15, %s2217_s0  ;;  %v1711_v62 = vpop.f32.mrf.mxu1 }
 0x26f   :  { %v1240_v48 = vpop.f32.mrf.mxu2  ;;  %v1567_v2 = vpop.f32.mrf.mxu3 }
 0x270   :  { %v1241_v19 = vadd.f32 %v1240_v48, %v1184_v43 }
 0x272   :  { %v1282_v58 = vadd.f32 %v1281_v33, %v1241_v19 }
 0x274   :  { %2052 = vst.msk [vmem:[#allocation5 + $0x18] sm:$0xff] %vm2048_vm3, %v1282_v58  ;;  %2097 = vrot.lane.b32.xlu0 %v1282_v58, %s2218_s10  ;;  %2063 = vrot.lane.b32.xlu1 %v1282_v58, %s2217_s0  ;;  %v1658_v40 = vpop.f32.mrf.mxu0 }
 0x275   :  { %2095 = vrot.lane.b32.xlu2 %v1278_v28, %s2218_s10  ;;  %v1715_v8 = vpop.f32.mrf.mxu1 }
 0x277   :  { %v1513_v42 = vpop.f32.mrf.mxu2  ;;  %v1573_v51 = vpop.f32.mrf.mxu3 }
 0x278   :  { %v1514_v26 = vadd.f32 %v1513_v42, %v1448_v46 }
 0x27a   :  { %v1568_v1 = vadd.f32 %v1567_v2, %v1514_v26 }
 0x27c   :  { %v1662_v10 = vpop.f32.mrf.mxu0  ;;  %v1655_v14 = vadd.f32 %v1654_v9, %v1568_v1 }
 0x27d   :  { %2080 = vrot.lane.b32.xlu2 %v1282_v58, %s2219_s11  ;;  %v1929_v63 = vpop.f32.mrf.mxu1 }
 0x27e   :  { %v1704_v3 = vadd.f32 %v1703_v24, %v1655_v14 }
 0x27f   :  { %v1518_v22 = vpop.f32.mrf.mxu2  ;;  %v1579_v27 = vpop.f32.mrf.mxu3 }
 0x280   :  { %v1519_v20 = vadd.f32 %v1518_v22, %v1452_v38 }
 0x282   :  { %v1574_v54 = vadd.f32 %v1573_v51, %v1519_v20 }
 0x284   :  { %v1666_v12 = vpop.f32.mrf.mxu0  ;;  %v1659_v37 = vadd.f32 %v1658_v40, %v1574_v54 }
 0x285   :  { %v1935_v11 = vpop.f32.mrf.mxu1 }
 0x286   :  { %v1708_v18 = vadd.f32 %v1707_v57, %v1659_v37 }
 0x287   :  { %v1523_v56 = vpop.f32.mrf.mxu2  ;;  %v1585_v17 = vpop.f32.mrf.mxu3 }
 0x288   :  { %v1524_v34 = vadd.f32 %v1523_v56, %v1456_v35 }
 0x28a   :  { %v1580_v31 = vadd.f32 %v1579_v27, %v1524_v34 }
 0x28c   :  { %v1883_v13 = vpop.f32.mrf.mxu0  ;;  %v1663_v32 = vadd.f32 %v1662_v10, %v1580_v31 }
 0x28d   :  { %v1941_v56 = vpop.f32.mrf.mxu1 }
 0x28e   :  { %v1712_v7 = vadd.f32 %v1711_v62, %v1663_v32 }
 0x28f   :  { %v1528_v47 = vpop.f32.mrf.mxu2  ;;  %v1833_v36 = vpop.f32.mrf.mxu3 }
 0x290   :  { %v1529_v59 = vadd.f32 %v1528_v47, %v1460_v23 }
 0x292   :  { %v1586_v30 = vadd.f32 %v1585_v17, %v1529_v59 }
 0x294   :  { %v1888_v15 = vpop.f32.mrf.mxu0  ;;  %v1667_v2 = vadd.f32 %v1666_v12, %v1586_v30 }
 0x295   :  { %v1947_v62 = vpop.f32.mrf.mxu1 }
 0x296   :  { %v1716_v53 = vadd.f32 %v1715_v8, %v1667_v2 }
 0x297   :  { %v1748_v44 = vpop.f32.mrf.mxu2  ;;  %v1837_v41 = vpop.f32.mrf.mxu3 }
 0x298   :  { %v1749_v0 = vadd.f32 %v1748_v44, %v1704_v3 }
 0x29a   :  { %v1834_v55 = vadd.f32 %v1833_v36, %v1749_v0 }
 0x29c   :  { %v1884_v5 = vadd.f32 %v1883_v13, %v1834_v55  ;;  %v1893_v16 = vpop.f32.mrf.mxu0 }
 0x29e   :  { %v1930_v39 = vadd.f32 %v1929_v63, %v1884_v5 }
 0x29f   :  { %v1756_v29 = vpop.f32.mrf.mxu2  ;;  %v1841_v61 = vpop.f32.mrf.mxu3 }
 0x2a0   :  { %v1757_v4 = vadd.f32 %v1756_v29, %v1708_v18 }
 0x2a2   :  { %v1838_v52 = vadd.f32 %v1837_v41, %v1757_v4 }
 0x2a4   :  { %v1889_v48 = vadd.f32 %v1888_v15, %v1838_v52  ;;  %v1898_v44 = vpop.f32.mrf.mxu0 }
 0x2a6   :  { %v1936_v42 = vadd.f32 %v1935_v11, %v1889_v48 }
 0x2a7   :  { %v1764_v50 = vpop.f32.mrf.mxu2  ;;  %v1845_v21 = vpop.f32.mrf.mxu3 }
 0x2a8   :  { %v1765_v6 = vadd.f32 %v1764_v50, %v1712_v7 }
 0x2aa   :  { %v1842_v58 = vadd.f32 %v1841_v61, %v1765_v6 }
 0x2ac   :  { %v1894_v24 = vadd.f32 %v1893_v16, %v1842_v58 }
 0x2ae   :  { %v1942_v47 = vadd.f32 %v1941_v56, %v1894_v24 }
 0x2af   :  { %v1772_v49 = vpop.f32.mrf.mxu2  ;;  %v2033_v60 = vpop.f32.mrf.mxu3 }
 0x2b0   :  { %v1773_v27 = vadd.f32 %v1772_v49, %v1716_v53 }
 0x2b2   :  { %v1846_v17 = vadd.f32 %v1845_v21, %v1773_v27 }
 0x2b4   :  { %v1899_v46 = vadd.f32 %v1898_v44, %v1846_v17 }
 0x2b5   :  { %v2058_v45 = vpop.permute.xlu2 %2057 }
 0x2b6   :  { %2070 = vst.msk [vmem:[#allocation5 + $0x20] sm:$0xff] %vm2048_vm3, %v2058_v45  ;;  %v1948_v29 = vadd.f32 %v1947_v62, %v1899_v46 }
 0x2b7   :  { %v1992_v33 = vpop.f32.mrf.mxu2  ;;  %v2037_v19 = vpop.f32.mrf.mxu3 }
 0x2b8   :  { %v1993_v28 = vadd.f32 %v1992_v33, %v1930_v39 }
 0x2ba   :  { %v2034_v43 = vadd.f32 %v2033_v60, %v1993_v28 }
 0x2bc   :  { %2109 = vst.msk [vmem:[#allocation5 + $0x80] sm:$0xff] %vm2048_vm3, %v2034_v43  ;;  %2117 = vrot.lane.b32.xlu1 %v2034_v43, %s2217_s0 }
 0x2be   :  { %v2075_v51 = vpop.permute.xlu2 %2074 }
 0x2bf   :  { %v1996_v25 = vpop.f32.mrf.mxu2  ;;  %2087 = vst.msk [vmem:[#allocation5 + $0x40] sm:$0xff] %vm2048_vm3, %v2075_v51  ;;  %v2041_v40 = vpop.f32.mrf.mxu3 }
 0x2c0   :  { %v1997_v22 = vadd.f32 %v1996_v25, %v1936_v42 }
 0x2c2   :  { %v2038_v9 = vadd.f32 %v2037_v19, %v1997_v22 }
 0x2c4   :  { %2110 = vst.msk [vmem:[#allocation5 + $0x88] sm:$0xff] %vm2048_vm3, %v2038_v9  ;;  %2119 = vrot.lane.b32.xlu2 %v2038_v9, %s2217_s0 }
 0x2c7   :  { %v2060_v36 = vpop.permute.xlu2 %2059  ;;  %v2000_v57 = vpop.f32.mrf.mxu2 }
 0x2c8   :  { %2071 = vst.msk [vmem:[#allocation5 + $0x28] sm:$0xff] %vm2048_vm3, %v2060_v36  ;;  %v2001_v10 = vadd.f32 %v2000_v57, %v1942_v47  ;;  %v2045_v38 = vpop.f32.mrf.mxu3 }
 0x2ca   :  { %v2042_v41 = vadd.f32 %v2041_v40, %v2001_v10 }
 0x2cc   :  { %2111 = vst.msk [vmem:[#allocation5 + $0x90] sm:$0xff] %vm2048_vm3, %v2042_v41  ;;  %2121 = vrot.lane.b32.xlu0 %v2042_v41, %s2217_s0 }
 0x2cd   :  { %v2092_v26 = vpop.permute.xlu0 %2091 }
 0x2ce   :  { %2104 = vst.msk [vmem:[#allocation5 + $0x60] sm:$0xff] %vm2048_vm3, %v2092_v26 }
 0x2cf   :  { %v2096_v61 = vpop.permute.xlu2 %2095  ;;  %v2004_v12 = vpop.f32.mrf.mxu2 }
 0x2d0   :  { %2106 = vst.msk [vmem:[#allocation5 + $0x70] sm:$0xff] %vm2048_vm3, %v2096_v61  ;;  %v2005_v1 = vadd.f32 %v2004_v12, %v1948_v29 }
 0x2d2   :  { %v2046_v20 = vadd.f32 %v2045_v38, %v2005_v1 }
 0x2d4   :  { %2112 = vst.msk [vmem:[#allocation5 + $0x98] sm:$0xff] %vm2048_vm3, %v2046_v20  ;;  %2123 = vrot.lane.b32.xlu1 %v2046_v20, %s2217_s0 }
 0x2d5   :  { %v2094_v14 = vpop.permute.xlu1 %2093  ;;  %v2077_v8 = vpop.permute.xlu0 %2076 }
 0x2d6   :  { %2105 = vst.msk [vmem:[#allocation5 + $0x68] sm:$0xff] %vm2048_vm3, %v2094_v14 }
 0x2d7   :  { %v2081_v50 = vpop.permute.xlu2 %2080  ;;  %2088 = vst.msk [vmem:[#allocation5 + $0x48] sm:$0xff] %vm2048_vm3, %v2077_v8 }
 0x2d8   :  { %2090 = vst.msk [vmem:[#allocation5 + $0x58] sm:$0xff] %vm2048_vm3, %v2081_v50 }
 0x2de   :  { %v2079_v54 = vpop.permute.xlu1 %2078  ;;  %v2062_v3 = vpop.permute.xlu0 %2061 }
 0x2df   :  { %2089 = vst.msk [vmem:[#allocation5 + $0x50] sm:$0xff] %vm2048_vm3, %v2079_v54 }
 0x2e0   :  { %2072 = vst.msk [vmem:[#allocation5 + $0x30] sm:$0xff] %vm2048_vm3, %v2062_v3 }
 0x2e6   :  { %v2098_v21 = vpop.permute.xlu0 %2097  ;;  %v2064_v35 = vpop.permute.xlu1 %2063 }
 0x2e7   :  { %2107 = vst.msk [vmem:[#allocation5 + $0x78] sm:$0xff] %vm2048_vm3, %v2098_v21 }
 0x2e8   :  { %2073 = vst.msk [vmem:[#allocation5 + $0x38] sm:$0xff] %vm2048_vm3, %v2064_v35 }
 0x31e   :  { %v2120_v13 = vpop.permute.xlu2 %2119 }
 0x31f   :  { %2131 = vst.msk [vmem:[#allocation5 + $0xa8] sm:$0xff] %vm2048_vm3, %v2120_v13 }
 0x32e   :  { %v2118_v0 = vpop.permute.xlu1 %2117 }
 0x32f   :  { %2130 = vst.msk [vmem:[#allocation5 + $0xa0] sm:$0xff] %vm2048_vm3, %v2118_v0 }
 0x33e   :  { %v2122_v34 = vpop.permute.xlu0 %2121 }
 0x33f   :  { %2132 = vst.msk [vmem:[#allocation5 + $0xb0] sm:$0xff] %vm2048_vm3, %v2122_v34 }
 0x346   :  { %v2124_v37 = vpop.permute.xlu1 %2123 }
 0x347   :  { %2133 = vst.msk [vmem:[#allocation5 + $0xb8] sm:$0xff] %vm2048_vm3, %v2124_v37 }
 0x348   :  { %2146 = dma.vmem_to_hbm [thread:$0]  %s2139_s13, 3072, %s2141_s16, [#allocation4], %s2221_s17, %s2221_s17, %s2222_s18  }
 0x349   :  { %2212 = dma.done.wait [#allocation4], 3072  }
 0x34a   :  { %2213 = vsyncadd [#allocation4], 4294964224 }
 0x34b   :  { %2151 = vsyncpa [#allocation3], 1 }
 0x34c   :  { %2152 = vsyncpa [#allocation4], 1 }

</bundles_post_ra>
